<compile_context>
chip_gen: v5e
topology: v5e:2x2
jax: 0.10.0
libtpu: 0.0.40
codegen_flags: <defaults>
</compile_context>

<pallas_src>
import math
from functools import partial

import jax
import jax.numpy as jnp
from jax.experimental import pallas as pl
from jax.experimental.pallas import tpu as pltpu


# ----------------------------------------------------------------------------
# helpers
# ----------------------------------------------------------------------------
def _round_up(x, m):
    return (x + m - 1) // m * m


def _pick_tk(kp, cap=1024):
    """Largest multiple of 128 that divides kp and is <= cap (fewest K steps,
    no extra K padding)."""
    best = 128
    t = 128
    while t <= min(kp, cap):
        if kp % t == 0:
            best = t
        t += 128
    return best


# ----------------------------------------------------------------------------
# Pallas matmul with fused bias + activation epilogue (bf16 MXU, f32 acc)
# ----------------------------------------------------------------------------
_TM = 128
_TN = 128


def _mm_kernel(a_ref, b_ref, bias_ref, o_ref, acc_ref, *, activation):
    @pl.when(pl.program_id(2) == 0)
    def _():
        acc_ref[...] = jnp.zeros_like(acc_ref)

    acc_ref[...] += jnp.dot(a_ref[...], b_ref[...],
                            preferred_element_type=jnp.float32)

    @pl.when(pl.program_id(2) == pl.num_programs(2) - 1)
    def _():
        r = acc_ref[...] + bias_ref[...]
        if activation == "leaky_relu":
            r = jnp.where(r >= 0, r, 0.1 * r)
        o_ref[...] = r.astype(o_ref.dtype)


def matmul_bias_act(a, b_packed, bias_packed, activation=None):
    """a: (M, K).  b_packed: (Kp, Np) bf16 pre-padded at init.
    bias_packed: (1, Np) f32.  Returns (M, Np) f32 (callers slice columns)."""
    M, K = a.shape
    Kp, Np = b_packed.shape
    Mp = _round_up(M, _TM)
    a = a.astype(jnp.bfloat16)
    if (Mp, Kp) != (M, K):
        a = jnp.pad(a, ((0, Mp - M), (0, Kp - K)))
    tk = _pick_tk(Kp)
    out = pl.pallas_call(
        partial(_mm_kernel, activation=activation),
        out_shape=jax.ShapeDtypeStruct((Mp, Np), jnp.float32),
        grid_spec=pltpu.PrefetchScalarGridSpec(
            num_scalar_prefetch=0,
            grid=(Mp // _TM, Np // _TN, Kp // tk),
            in_specs=[pl.BlockSpec((_TM, tk), lambda i, j, k: (i, k)),
                      pl.BlockSpec((tk, _TN), lambda i, j, k: (k, j)),
                      pl.BlockSpec((1, _TN), lambda i, j, k: (0, j))],
            out_specs=pl.BlockSpec((_TM, _TN), lambda i, j, k: (i, j)),
            scratch_shapes=[pltpu.VMEM((_TM, _TN), jnp.float32)]),
        compiler_params=pltpu.CompilerParams(
            dimension_semantics=("parallel", "parallel", "arbitrary")),
    )(a, b_packed, bias_packed)
    return out[:M]


# ----------------------------------------------------------------------------
# Fused residual + SFT modulation:  out = x + dcn + x * gamma + beta
# (lane-dense 64 x 512 tiles, real GridSpec so it scales past VMEM)
# ----------------------------------------------------------------------------
_EW_ROWS = 64
_EW_LANES = 512


def _residual_sft_kernel(x_ref, d_ref, g_ref, b_ref, o_ref):
    x = x_ref[...]
    o_ref[...] = x + d_ref[...] + x * g_ref[...] + b_ref[...]


def fused_residual_sft(x_mat, dcn_mat, gamma_mat, beta_mat):
    shape = x_mat.shape
    L = x_mat.size
    blk = _EW_ROWS * _EW_LANES
    Lp = _round_up(L, blk)

    def prep(t):
        t = t.astype(jnp.float32).reshape(-1)
        if Lp != L:
            t = jnp.pad(t, (0, Lp - L))
        return t.reshape(Lp // _EW_LANES, _EW_LANES)

    ins = [prep(t) for t in (x_mat, dcn_mat, gamma_mat, beta_mat)]
    rows = Lp // _EW_LANES
    out = pl.pallas_call(
        _residual_sft_kernel,
        out_shape=jax.ShapeDtypeStruct((rows, _EW_LANES), jnp.float32),
        grid_spec=pltpu.PrefetchScalarGridSpec(
            num_scalar_prefetch=0,
            grid=(rows // _EW_ROWS,),
            in_specs=[pl.BlockSpec((_EW_ROWS, _EW_LANES), lambda i: (i, 0))] * 4,
            out_specs=pl.BlockSpec((_EW_ROWS, _EW_LANES), lambda i: (i, 0))),
        compiler_params=pltpu.CompilerParams(dimension_semantics=("parallel",)),
    )(*ins)
    return out.reshape(-1)[:L].reshape(shape)


# ----------------------------------------------------------------------------
# JAX glue: im2col patch gather & DCNv2 bilinear sampling (data dependent)
# ----------------------------------------------------------------------------
def _im2col(x, k, stride, padding, dilation=1):
    N, C, H, W = x.shape
    Ho = (H + 2 * padding - dilation * (k - 1) - 1) // stride + 1
    Wo = (W + 2 * padding - dilation * (k - 1) - 1) // stride + 1
    xp = jnp.pad(x, ((0, 0), (0, 0), (padding, padding), (padding, padding)))
    yy = (jnp.arange(Ho) * stride)[:, None] + (jnp.arange(k) * dilation)[None, :]
    xx = (jnp.arange(Wo) * stride)[:, None] + (jnp.arange(k) * dilation)[None, :]
    patches = xp[:, :, yy[:, None, :, None], xx[None, :, None, :]]   # (N,C,Ho,Wo,k,k)
    patches = patches.transpose(0, 2, 3, 1, 4, 5).reshape(N * Ho * Wo, C * k * k)
    return patches, Ho, Wo


def _deform_sample_cols(x, offset, mask, k, stride, padding, dilation):
    """mmcv-style modulated deformable sampling -> (N*Ho*Wo, C*k*k) columns."""
    N, C, H, W = x.shape
    kk = k * k
    Ho = (H + 2 * padding - dilation * (k - 1) - 1) // stride + 1
    Wo = (W + 2 * padding - dilation * (k - 1) - 1) // stride + 1
    off = offset.reshape(N, kk, 2, Ho, Wo)        # per tap: interleaved (dy, dx)
    dy, dx = off[:, :, 0], off[:, :, 1]           # (N, kk, Ho, Wo)
    kidx = jnp.arange(kk)
    ky = (kidx // k) * dilation
    kx = (kidx % k) * dilation
    base_y = (jnp.arange(Ho) * stride - padding)[None, :, None] + ky[:, None, None]
    base_x = (jnp.arange(Wo) * stride - padding)[None, None, :] + kx[:, None, None]
    sy = base_y[None].astype(jnp.float32) + dy
    sx = base_x[None].astype(jnp.float32) + dx
    y0, x0 = jnp.floor(sy), jnp.floor(sx)
    y1, x1 = y0 + 1.0, x0 + 1.0
    wy1, wx1 = sy - y0, sx - x0
    wy0, wx0 = 1.0 - wy1, 1.0 - wx1
    x_flat = x.reshape(N, C, H * W)

    def gather(yi, xi):
        valid = ((yi >= 0) & (yi < H) & (xi >= 0) & (xi < W)).astype(x.dtype)
        yc = jnp.clip(yi, 0, H - 1).astype(jnp.int32)
        xc = jnp.clip(xi, 0, W - 1).astype(jnp.int32)
        idx = (yc * W + xc).reshape(N, -1)
        vals = jax.vmap(lambda img, i: img[:, i])(x_flat, idx)   # (N, C, kk*Ho*Wo)
        return vals.reshape(N, C, kk, Ho, Wo) * valid[:, None]

    sampled = (gather(y0, x0) * (wy0 * wx0)[:, None]
               + gather(y0, x1) * (wy0 * wx1)[:, None]
               + gather(y1, x0) * (wy1 * wx0)[:, None]
               + gather(y1, x1) * (wy1 * wx1)[:, None])
    sampled = sampled * mask[:, None]                            # modulation
    cols = sampled.transpose(0, 3, 4, 1, 2).reshape(N * Ho * Wo, C * kk)
    return cols, Ho, Wo


# ----------------------------------------------------------------------------
# parameter construction (weights packed bf16 + padded once, at init)
# ----------------------------------------------------------------------------
def _pack_weight(w_kn):
    K, N = w_kn.shape
    Kp, Np = _round_up(K, 128), _round_up(N, 128)
    return jnp.zeros((Kp, Np), jnp.bfloat16).at[:K, :N].set(w_kn.astype(jnp.bfloat16))


def _pack_bias(b, n):
    Np = _round_up(n, 128)
    out = jnp.zeros((1, Np), jnp.float32)
    if b is not None:
        out = out.at[0, :n].set(b.astype(jnp.float32))
    return out


def _block_diag(a, b):
    n1, m1 = a.shape
    n2, m2 = b.shape
    out = jnp.zeros((n1 + n2, m1 + m2), jnp.float32)
    return out.at[:n1, :m1].set(a).at[n1:, m1:].set(b)


def init_minildb(key, cin, cout, k):
    kk = k * k
    ks = jax.random.split(key, 7)

    def w(kkey, shape):
        fan_in = 1
        for d in shape[1:]:
            fan_in *= d
        return jax.random.normal(kkey, shape, jnp.float32) / math.sqrt(max(fan_in, 1))

    dcn_w = w(ks[0], (cout, cin, k, k))                   # DCN main weight (bias=False)
    off_w = w(ks[1], (3 * kk, 2 * cin, k, k))             # conv_offset_mask weight
    off_b = 0.01 * jax.random.normal(ks[2], (3 * kk,), jnp.float32)
    g1 = w(ks[3], (cout, cin, 1, 1)).reshape(cout, cin)   # SFT 1x1 convs (bias=False)
    g2 = w(ks[4], (cout, cout, 1, 1)).reshape(cout, cout)
    b1 = w(ks[5], (cout, cin, 1, 1)).reshape(cout, cin)
    b2 = w(ks[6], (cout, cout, 1, 1)).reshape(cout, cout)

    return {
        # conv_offset_mask as (2*cin*kk, 3*kk) matmul with fused bias
        'off_w': _pack_weight(off_w.reshape(3 * kk, 2 * cin * kk).T),
        'off_b': _pack_bias(off_b, 3 * kk),
        # modulated deformable conv reduction: (cin*kk, cout)
        'dcn_w': _pack_weight(dcn_w.reshape(cout, cin * kk).T),
        'dcn_b': _pack_bias(None, cout),
        # SFT stage 1 (gamma | beta stacked): (cin, 2*cout), LeakyReLU fused
        'sft1_w': _pack_weight(jnp.concatenate([g1, b1], axis=0).T),
        # SFT stage 2 (block diagonal): (2*cout, 2*cout)
        'sft2_w': _pack_weight(_block_diag(g2.T, b2.T)),
        'sft_b': _pack_bias(None, 2 * cout),
    }


# ----------------------------------------------------------------------------
# miniLDB forward:  x + DCN_layer(x, inter) + SFT_layer(x, inter)
# ----------------------------------------------------------------------------
def minildb_forward(params, x, inter, *, k, cout):
    N, C, H, W = x.shape
    kk = k * k
    pad = (k - 1) // 2
    M = N * H * W

    # DCN_layer.conv_offset_mask on cat([x, inter], dim=1)  (bias fused in epilogue)
    cat = jnp.concatenate([x, inter], axis=1)
    cols, Ho, Wo = _im2col(cat, k, stride=1, padding=pad)
    off_mask = matmul_bias_act(cols, params['off_w'], params['off_b'])[:, :3 * kk]
    off_mask = off_mask.reshape(N, Ho, Wo, 3 * kk).transpose(0, 3, 1, 2)
    o1, o2, mask = off_mask[:, :kk], off_mask[:, kk:2 * kk], off_mask[:, 2 * kk:]
    offset = jnp.concatenate([o1, o2], axis=1)
    mask = jax.nn.sigmoid(mask)     # tiny (N, k*k, H, W) tensor; left to XLA

    # modulated deformable conv (bilinear gather in JAX, C*k*k reduction on MXU)
    dcn_cols, _, _ = _deform_sample_cols(x, offset, mask, k, 1, pad, 1)
    dcn_mat = matmul_bias_act(dcn_cols, params['dcn_w'], params['dcn_b'])[:, :cout]

    # SFT_layer: batched 1x1 convs; LeakyReLU(0.1) fused into stage-1 epilogue
    inter_mat = inter.transpose(0, 2, 3, 1).reshape(M, C)
    h = matmul_bias_act(inter_mat, params['sft1_w'], params['sft_b'],
                        activation='leaky_relu')            # padded cols stay zero
    gb = matmul_bias_act(h, params['sft2_w'], params['sft_b'])
    gamma_mat, beta_mat = gb[:, :cout], gb[:, cout:2 * cout]

    # fused residual + modulation:  x + dcn + x*gamma + beta
    x_mat = x.transpose(0, 2, 3, 1).reshape(M, C)
    out_mat = fused_residual_sft(x_mat, dcn_mat, gamma_mat, beta_mat)
    return out_mat.reshape(N, H, W, cout).transpose(0, 3, 1, 2)


# ----------------------------------------------------------------------------
if __name__ == "__main__":
    B, C, H, W = 2, 64, 16, 16
    KSIZE = 3

    root = jax.random.PRNGKey(0)
    k_x, k_i, k_p = jax.random.split(root, 3)
    x = jax.random.normal(k_x, (B, C, H, W), jnp.float32)
    inter = jax.random.normal(k_i, (B, C, H, W), jnp.float32)

    params = init_minildb(k_p, C, C, KSIZE)

    fwd = jax.jit(partial(minildb_forward, k=KSIZE, cout=C))
    out = fwd(params, x, inter)
    out = jax.block_until_ready(out)

    assert out.shape == (B, C, H, W)
    assert bool(jnp.all(jnp.isfinite(out)))
    print("KERNEL_OK")
</pallas_src>

<mosaic_0001>
module attributes {stable_mosaic.version = 11 : i64} {
  func.func @_mm_kernel(%arg0: i32, %arg1: i32, %arg2: i32, %arg3: memref<128x384xbf16, #tpu.memory_space<vmem>>, %arg4: memref<384x128xbf16, #tpu.memory_space<vmem>>, %arg5: memref<1x128xf32, #tpu.memory_space<vmem>>, %arg6: memref<128x128xf32, #tpu.memory_space<vmem>>, %arg7: memref<128x128xf32, #tpu.memory_space<vmem>>) attributes {dimension_semantics = [#tpu.dimension_semantics<parallel>, #tpu.dimension_semantics<parallel>, #tpu.dimension_semantics<arbitrary>], iteration_bounds = array<i64: 4, 1, 3>, scalar_prefetch = 0 : i64, scratch_operands = 1 : i64, tpu.core_type = #tpu.core_type<tc>, window_params = [{transform_indices = @transform_0, window_bounds = array<i64: 128, 384>}, {transform_indices = @transform_1, window_bounds = array<i64: 384, 128>}, {transform_indices = @transform_2, window_bounds = array<i64: 1, 128>}, {transform_indices = @transform_3, window_bounds = array<i64: 128, 128>}]} {
    %c0_i32 = arith.constant 0 : i32
    %0 = arith.cmpi eq, %arg2, %c0_i32 : i32
    %1 = arith.extui %0 : i1 to i32
    %c0_i32_0 = arith.constant 0 : i32
    %2 = arith.cmpi ne, %1, %c0_i32_0 : i32
    scf.if %2 {
      %cst_9 = arith.constant 0.000000e+00 : f32
      %12 = vector.broadcast %cst_9 : f32 to vector<128x128xf32>
      %c0_10 = arith.constant 0 : index
      %c0_11 = arith.constant 0 : index
      %13 = vector.load %arg7[%c0_10, %c0_11] : memref<128x128xf32, #tpu.memory_space<vmem>>, vector<128x128xf32>
      tpu.vector_store %arg7[%c0_10, %c0_11], %12 {strides = array<i32>} : memref<128x128xf32, #tpu.memory_space<vmem>>, vector<128x128xf32>,
    } else {
    }
    %c0 = arith.constant 0 : index
    %c0_1 = arith.constant 0 : index
    %3 = vector.load %arg7[%c0, %c0_1] : memref<128x128xf32, #tpu.memory_space<vmem>>, vector<128x128xf32>
    %c0_2 = arith.constant 0 : index
    %c0_3 = arith.constant 0 : index
    %4 = vector.load %arg3[%c0_2, %c0_3] : memref<128x384xbf16, #tpu.memory_space<vmem>>, vector<128x384xbf16>
    %c0_4 = arith.constant 0 : index
    %c0_5 = arith.constant 0 : index
    %5 = vector.load %arg4[%c0_4, %c0_5] : memref<384x128xbf16, #tpu.memory_space<vmem>>, vector<384x128xbf16>
    %cst = arith.constant dense<0.000000e+00> : vector<128x128xf32>
    %6 = tpu.matmul %4, %5, %cst {dimension_numbers = #tpu.dot_dimension_numbers<[1], [0], [0], [1], [0, 0, 1, 1], [], []>} : vector<128x384xbf16>, vector<384x128xbf16>, vector<128x128xf32> -> vector<128x128xf32>
    %7 = arith.addf %3, %6 : vector<128x128xf32>
    %c0_6 = arith.constant 0 : index
    %c0_7 = arith.constant 0 : index
    %8 = vector.load %arg7[%c0_6, %c0_7] : memref<128x128xf32, #tpu.memory_space<vmem>>, vector<128x128xf32>
    tpu.vector_store %arg7[%c0_6, %c0_7], %7 {strides = array<i32>} : memref<128x128xf32, #tpu.memory_space<vmem>>, vector<128x128xf32>,
    %c2_i32 = arith.constant 2 : i32
    %9 = arith.cmpi eq, %arg2, %c2_i32 : i32
    %10 = arith.extui %9 : i1 to i32
    %c0_i32_8 = arith.constant 0 : i32
    %11 = arith.cmpi ne, %10, %c0_i32_8 : i32
    scf.if %11 {
      %c0_9 = arith.constant 0 : index
      %c0_10 = arith.constant 0 : index
      %12 = vector.load %arg7[%c0_9, %c0_10] : memref<128x128xf32, #tpu.memory_space<vmem>>, vector<128x128xf32>
      %c0_11 = arith.constant 0 : index
      %c0_12 = arith.constant 0 : index
      %13 = vector.load %arg5[%c0_11, %c0_12] : memref<1x128xf32, #tpu.memory_space<vmem>>, vector<1x128xf32>
      %14 = vector.broadcast %13 : vector<1x128xf32> to vector<128x128xf32>
      %15 = arith.addf %12, %14 : vector<128x128xf32>
      %c0_13 = arith.constant 0 : index
      %c0_14 = arith.constant 0 : index
      %16 = vector.load %arg6[%c0_13, %c0_14] : memref<128x128xf32, #tpu.memory_space<vmem>>, vector<128x128xf32>
      tpu.vector_store %arg6[%c0_13, %c0_14], %15 {strides = array<i32>} : memref<128x128xf32, #tpu.memory_space<vmem>>, vector<128x128xf32>,
    } else {
    }
    return
  }
  func.func @transform_0(%arg0: i32, %arg1: i32, %arg2: i32) -> (i32, i32) {
    %c0_i32 = arith.constant 0 : i32
    return %arg0, %arg2 : i32, i32
  }
  func.func @transform_1(%arg0: i32, %arg1: i32, %arg2: i32) -> (i32, i32) {
    %c0_i32 = arith.constant 0 : i32
    return %arg2, %arg1 : i32, i32
  }
  func.func @transform_2(%arg0: i32, %arg1: i32, %arg2: i32) -> (i32, i32) {
    %c0_i32 = arith.constant 0 : i32
    %c0_i32_0 = arith.constant 0 : i32
    return %c0_i32, %arg1 : i32, i32
  }
  func.func @transform_3(%arg0: i32, %arg1: i32, %arg2: i32) -> (i32, i32) {
    %c0_i32 = arith.constant 0 : i32
    return %arg0, %arg1 : i32, i32
  }
}

module attributes {stable_mosaic.version = 11 : i64} {
  func.func @_mm_kernel(%arg0: i32, %arg1: i32, %arg2: i32, %arg3: memref<128x640xbf16, #tpu.memory_space<vmem>>, %arg4: memref<640x128xbf16, #tpu.memory_space<vmem>>, %arg5: memref<1x128xf32, #tpu.memory_space<vmem>>, %arg6: memref<128x128xf32, #tpu.memory_space<vmem>>, %arg7: memref<128x128xf32, #tpu.memory_space<vmem>>) attributes {dimension_semantics = [#tpu.dimension_semantics<parallel>, #tpu.dimension_semantics<parallel>, #tpu.dimension_semantics<arbitrary>], iteration_bounds = array<i64: 4, 1, 1>, scalar_prefetch = 0 : i64, scratch_operands = 1 : i64, tpu.core_type = #tpu.core_type<tc>, window_params = [{transform_indices = @transform_0, window_bounds = array<i64: 128, 640>}, {transform_indices = @transform_1, window_bounds = array<i64: 640, 128>}, {transform_indices = @transform_2, window_bounds = array<i64: 1, 128>}, {transform_indices = @transform_3, window_bounds = array<i64: 128, 128>}]} {
    %c0_i32 = arith.constant 0 : i32
    %0 = arith.cmpi eq, %arg2, %c0_i32 : i32
    %1 = arith.extui %0 : i1 to i32
    %c0_i32_0 = arith.constant 0 : i32
    %2 = arith.cmpi ne, %1, %c0_i32_0 : i32
    scf.if %2 {
      %cst_10 = arith.constant 0.000000e+00 : f32
      %12 = vector.broadcast %cst_10 : f32 to vector<128x128xf32>
      %c0_11 = arith.constant 0 : index
      %c0_12 = arith.constant 0 : index
      %13 = vector.load %arg7[%c0_11, %c0_12] : memref<128x128xf32, #tpu.memory_space<vmem>>, vector<128x128xf32>
      tpu.vector_store %arg7[%c0_11, %c0_12], %12 {strides = array<i32>} : memref<128x128xf32, #tpu.memory_space<vmem>>, vector<128x128xf32>,
    } else {
    }
    %c0 = arith.constant 0 : index
    %c0_1 = arith.constant 0 : index
    %3 = vector.load %arg7[%c0, %c0_1] : memref<128x128xf32, #tpu.memory_space<vmem>>, vector<128x128xf32>
    %c0_2 = arith.constant 0 : index
    %c0_3 = arith.constant 0 : index
    %4 = vector.load %arg3[%c0_2, %c0_3] : memref<128x640xbf16, #tpu.memory_space<vmem>>, vector<128x640xbf16>
    %c0_4 = arith.constant 0 : index
    %c0_5 = arith.constant 0 : index
    %5 = vector.load %arg4[%c0_4, %c0_5] : memref<640x128xbf16, #tpu.memory_space<vmem>>, vector<640x128xbf16>
    %cst = arith.constant dense<0.000000e+00> : vector<128x128xf32>
    %6 = tpu.matmul %4, %5, %cst {dimension_numbers = #tpu.dot_dimension_numbers<[1], [0], [0], [1], [0, 0, 1, 1], [], []>} : vector<128x640xbf16>, vector<640x128xbf16>, vector<128x128xf32> -> vector<128x128xf32>
    %7 = arith.addf %3, %6 : vector<128x128xf32>
    %c0_6 = arith.constant 0 : index
    %c0_7 = arith.constant 0 : index
    %8 = vector.load %arg7[%c0_6, %c0_7] : memref<128x128xf32, #tpu.memory_space<vmem>>, vector<128x128xf32>
    tpu.vector_store %arg7[%c0_6, %c0_7], %7 {strides = array<i32>} : memref<128x128xf32, #tpu.memory_space<vmem>>, vector<128x128xf32>,
    %c0_i32_8 = arith.constant 0 : i32
    %9 = arith.cmpi eq, %arg2, %c0_i32_8 : i32
    %10 = arith.extui %9 : i1 to i32
    %c0_i32_9 = arith.constant 0 : i32
    %11 = arith.cmpi ne, %10, %c0_i32_9 : i32
    scf.if %11 {
      %c0_10 = arith.constant 0 : index
      %c0_11 = arith.constant 0 : index
      %12 = vector.load %arg7[%c0_10, %c0_11] : memref<128x128xf32, #tpu.memory_space<vmem>>, vector<128x128xf32>
      %c0_12 = arith.constant 0 : index
      %c0_13 = arith.constant 0 : index
      %13 = vector.load %arg5[%c0_12, %c0_13] : memref<1x128xf32, #tpu.memory_space<vmem>>, vector<1x128xf32>
      %14 = vector.broadcast %13 : vector<1x128xf32> to vector<128x128xf32>
      %15 = arith.addf %12, %14 : vector<128x128xf32>
      %c0_14 = arith.constant 0 : index
      %c0_15 = arith.constant 0 : index
      %16 = vector.load %arg6[%c0_14, %c0_15] : memref<128x128xf32, #tpu.memory_space<vmem>>, vector<128x128xf32>
      tpu.vector_store %arg6[%c0_14, %c0_15], %15 {strides = array<i32>} : memref<128x128xf32, #tpu.memory_space<vmem>>, vector<128x128xf32>,
    } else {
    }
    return
  }
  func.func @transform_0(%arg0: i32, %arg1: i32, %arg2: i32) -> (i32, i32) {
    %c0_i32 = arith.constant 0 : i32
    return %arg0, %arg2 : i32, i32
  }
  func.func @transform_1(%arg0: i32, %arg1: i32, %arg2: i32) -> (i32, i32) {
    %c0_i32 = arith.constant 0 : i32
    return %arg2, %arg1 : i32, i32
  }
  func.func @transform_2(%arg0: i32, %arg1: i32, %arg2: i32) -> (i32, i32) {
    %c0_i32 = arith.constant 0 : i32
    %c0_i32_0 = arith.constant 0 : i32
    return %c0_i32, %arg1 : i32, i32
  }
  func.func @transform_3(%arg0: i32, %arg1: i32, %arg2: i32) -> (i32, i32) {
    %c0_i32 = arith.constant 0 : i32
    return %arg0, %arg1 : i32, i32
  }
}

module attributes {stable_mosaic.version = 11 : i64} {
  func.func @_mm_kernel(%arg0: i32, %arg1: i32, %arg2: i32, %arg3: memref<128x128xbf16, #tpu.memory_space<vmem>>, %arg4: memref<128x128xbf16, #tpu.memory_space<vmem>>, %arg5: memref<1x128xf32, #tpu.memory_space<vmem>>, %arg6: memref<128x128xf32, #tpu.memory_space<vmem>>, %arg7: memref<128x128xf32, #tpu.memory_space<vmem>>) attributes {dimension_semantics = [#tpu.dimension_semantics<parallel>, #tpu.dimension_semantics<parallel>, #tpu.dimension_semantics<arbitrary>], iteration_bounds = array<i64: 4, 1, 1>, scalar_prefetch = 0 : i64, scratch_operands = 1 : i64, tpu.core_type = #tpu.core_type<tc>, window_params = [{transform_indices = @transform_0, window_bounds = array<i64: 128, 128>}, {transform_indices = @transform_1, window_bounds = array<i64: 128, 128>}, {transform_indices = @transform_2, window_bounds = array<i64: 1, 128>}, {transform_indices = @transform_3, window_bounds = array<i64: 128, 128>}]} {
    %c0_i32 = arith.constant 0 : i32
    %0 = arith.cmpi eq, %arg2, %c0_i32 : i32
    %1 = arith.extui %0 : i1 to i32
    %c0_i32_0 = arith.constant 0 : i32
    %2 = arith.cmpi ne, %1, %c0_i32_0 : i32
    scf.if %2 {
      %cst_10 = arith.constant 0.000000e+00 : f32
      %12 = vector.broadcast %cst_10 : f32 to vector<128x128xf32>
      %c0_11 = arith.constant 0 : index
      %c0_12 = arith.constant 0 : index
      %13 = vector.load %arg7[%c0_11, %c0_12] : memref<128x128xf32, #tpu.memory_space<vmem>>, vector<128x128xf32>
      tpu.vector_store %arg7[%c0_11, %c0_12], %12 {strides = array<i32>} : memref<128x128xf32, #tpu.memory_space<vmem>>, vector<128x128xf32>,
    } else {
    }
    %c0 = arith.constant 0 : index
    %c0_1 = arith.constant 0 : index
    %3 = vector.load %arg7[%c0, %c0_1] : memref<128x128xf32, #tpu.memory_space<vmem>>, vector<128x128xf32>
    %c0_2 = arith.constant 0 : index
    %c0_3 = arith.constant 0 : index
    %4 = vector.load %arg3[%c0_2, %c0_3] : memref<128x128xbf16, #tpu.memory_space<vmem>>, vector<128x128xbf16>
    %c0_4 = arith.constant 0 : index
    %c0_5 = arith.constant 0 : index
    %5 = vector.load %arg4[%c0_4, %c0_5] : memref<128x128xbf16, #tpu.memory_space<vmem>>, vector<128x128xbf16>
    %cst = arith.constant dense<0.000000e+00> : vector<128x128xf32>
    %6 = tpu.matmul %4, %5, %cst {dimension_numbers = #tpu.dot_dimension_numbers<[1], [0], [0], [1], [0, 0, 1, 1], [], []>} : vector<128x128xbf16>, vector<128x128xbf16>, vector<128x128xf32> -> vector<128x128xf32>
    %7 = arith.addf %3, %6 : vector<128x128xf32>
    %c0_6 = arith.constant 0 : index
    %c0_7 = arith.constant 0 : index
    %8 = vector.load %arg7[%c0_6, %c0_7] : memref<128x128xf32, #tpu.memory_space<vmem>>, vector<128x128xf32>
    tpu.vector_store %arg7[%c0_6, %c0_7], %7 {strides = array<i32>} : memref<128x128xf32, #tpu.memory_space<vmem>>, vector<128x128xf32>,
    %c0_i32_8 = arith.constant 0 : i32
    %9 = arith.cmpi eq, %arg2, %c0_i32_8 : i32
    %10 = arith.extui %9 : i1 to i32
    %c0_i32_9 = arith.constant 0 : i32
    %11 = arith.cmpi ne, %10, %c0_i32_9 : i32
    scf.if %11 {
      %c0_10 = arith.constant 0 : index
      %c0_11 = arith.constant 0 : index
      %12 = vector.load %arg7[%c0_10, %c0_11] : memref<128x128xf32, #tpu.memory_space<vmem>>, vector<128x128xf32>
      %c0_12 = arith.constant 0 : index
      %c0_13 = arith.constant 0 : index
      %13 = vector.load %arg5[%c0_12, %c0_13] : memref<1x128xf32, #tpu.memory_space<vmem>>, vector<1x128xf32>
      %14 = vector.broadcast %13 : vector<1x128xf32> to vector<128x128xf32>
      %15 = arith.addf %12, %14 : vector<128x128xf32>
      %cst_14 = arith.constant 0.000000e+00 : f32
      %16 = vector.broadcast %cst_14 : f32 to vector<128x128xf32>
      %17 = arith.cmpf oge, %15, %16 : vector<128x128xf32>
      %cst_15 = arith.constant 1.000000e-01 : f32
      %18 = vector.broadcast %cst_15 : f32 to vector<128x128xf32>
      %19 = arith.mulf %18, %15 : vector<128x128xf32>
      %20 = arith.select %17, %15, %19 : vector<128x128xi1>, vector<128x128xf32>
      %c0_16 = arith.constant 0 : index
      %c0_17 = arith.constant 0 : index
      %21 = vector.load %arg6[%c0_16, %c0_17] : memref<128x128xf32, #tpu.memory_space<vmem>>, vector<128x128xf32>
      tpu.vector_store %arg6[%c0_16, %c0_17], %20 {strides = array<i32>} : memref<128x128xf32, #tpu.memory_space<vmem>>, vector<128x128xf32>,
    } else {
    }
    return
  }
  func.func @transform_0(%arg0: i32, %arg1: i32, %arg2: i32) -> (i32, i32) {
    %c0_i32 = arith.constant 0 : i32
    return %arg0, %arg2 : i32, i32
  }
  func.func @transform_1(%arg0: i32, %arg1: i32, %arg2: i32) -> (i32, i32) {
    %c0_i32 = arith.constant 0 : i32
    return %arg2, %arg1 : i32, i32
  }
  func.func @transform_2(%arg0: i32, %arg1: i32, %arg2: i32) -> (i32, i32) {
    %c0_i32 = arith.constant 0 : i32
    %c0_i32_0 = arith.constant 0 : i32
    return %c0_i32, %arg1 : i32, i32
  }
  func.func @transform_3(%arg0: i32, %arg1: i32, %arg2: i32) -> (i32, i32) {
    %c0_i32 = arith.constant 0 : i32
    return %arg0, %arg1 : i32, i32
  }
}

module attributes {stable_mosaic.version = 11 : i64} {
  func.func @_mm_kernel(%arg0: i32, %arg1: i32, %arg2: i32, %arg3: memref<128x128xbf16, #tpu.memory_space<vmem>>, %arg4: memref<128x128xbf16, #tpu.memory_space<vmem>>, %arg5: memref<1x128xf32, #tpu.memory_space<vmem>>, %arg6: memref<128x128xf32, #tpu.memory_space<vmem>>, %arg7: memref<128x128xf32, #tpu.memory_space<vmem>>) attributes {dimension_semantics = [#tpu.dimension_semantics<parallel>, #tpu.dimension_semantics<parallel>, #tpu.dimension_semantics<arbitrary>], iteration_bounds = array<i64: 4, 1, 1>, scalar_prefetch = 0 : i64, scratch_operands = 1 : i64, tpu.core_type = #tpu.core_type<tc>, window_params = [{transform_indices = @transform_0, window_bounds = array<i64: 128, 128>}, {transform_indices = @transform_1, window_bounds = array<i64: 128, 128>}, {transform_indices = @transform_2, window_bounds = array<i64: 1, 128>}, {transform_indices = @transform_3, window_bounds = array<i64: 128, 128>}]} {
    %c0_i32 = arith.constant 0 : i32
    %0 = arith.cmpi eq, %arg2, %c0_i32 : i32
    %1 = arith.extui %0 : i1 to i32
    %c0_i32_0 = arith.constant 0 : i32
    %2 = arith.cmpi ne, %1, %c0_i32_0 : i32
    scf.if %2 {
      %cst_10 = arith.constant 0.000000e+00 : f32
      %12 = vector.broadcast %cst_10 : f32 to vector<128x128xf32>
      %c0_11 = arith.constant 0 : index
      %c0_12 = arith.constant 0 : index
      %13 = vector.load %arg7[%c0_11, %c0_12] : memref<128x128xf32, #tpu.memory_space<vmem>>, vector<128x128xf32>
      tpu.vector_store %arg7[%c0_11, %c0_12], %12 {strides = array<i32>} : memref<128x128xf32, #tpu.memory_space<vmem>>, vector<128x128xf32>,
    } else {
    }
    %c0 = arith.constant 0 : index
    %c0_1 = arith.constant 0 : index
    %3 = vector.load %arg7[%c0, %c0_1] : memref<128x128xf32, #tpu.memory_space<vmem>>, vector<128x128xf32>
    %c0_2 = arith.constant 0 : index
    %c0_3 = arith.constant 0 : index
    %4 = vector.load %arg3[%c0_2, %c0_3] : memref<128x128xbf16, #tpu.memory_space<vmem>>, vector<128x128xbf16>
    %c0_4 = arith.constant 0 : index
    %c0_5 = arith.constant 0 : index
    %5 = vector.load %arg4[%c0_4, %c0_5] : memref<128x128xbf16, #tpu.memory_space<vmem>>, vector<128x128xbf16>
    %cst = arith.constant dense<0.000000e+00> : vector<128x128xf32>
    %6 = tpu.matmul %4, %5, %cst {dimension_numbers = #tpu.dot_dimension_numbers<[1], [0], [0], [1], [0, 0, 1, 1], [], []>} : vector<128x128xbf16>, vector<128x128xbf16>, vector<128x128xf32> -> vector<128x128xf32>
    %7 = arith.addf %3, %6 : vector<128x128xf32>
    %c0_6 = arith.constant 0 : index
    %c0_7 = arith.constant 0 : index
    %8 = vector.load %arg7[%c0_6, %c0_7] : memref<128x128xf32, #tpu.memory_space<vmem>>, vector<128x128xf32>
    tpu.vector_store %arg7[%c0_6, %c0_7], %7 {strides = array<i32>} : memref<128x128xf32, #tpu.memory_space<vmem>>, vector<128x128xf32>,
    %c0_i32_8 = arith.constant 0 : i32
    %9 = arith.cmpi eq, %arg2, %c0_i32_8 : i32
    %10 = arith.extui %9 : i1 to i32
    %c0_i32_9 = arith.constant 0 : i32
    %11 = arith.cmpi ne, %10, %c0_i32_9 : i32
    scf.if %11 {
      %c0_10 = arith.constant 0 : index
      %c0_11 = arith.constant 0 : index
      %12 = vector.load %arg7[%c0_10, %c0_11] : memref<128x128xf32, #tpu.memory_space<vmem>>, vector<128x128xf32>
      %c0_12 = arith.constant 0 : index
      %c0_13 = arith.constant 0 : index
      %13 = vector.load %arg5[%c0_12, %c0_13] : memref<1x128xf32, #tpu.memory_space<vmem>>, vector<1x128xf32>
      %14 = vector.broadcast %13 : vector<1x128xf32> to vector<128x128xf32>
      %15 = arith.addf %12, %14 : vector<128x128xf32>
      %c0_14 = arith.constant 0 : index
      %c0_15 = arith.constant 0 : index
      %16 = vector.load %arg6[%c0_14, %c0_15] : memref<128x128xf32, #tpu.memory_space<vmem>>, vector<128x128xf32>
      tpu.vector_store %arg6[%c0_14, %c0_15], %15 {strides = array<i32>} : memref<128x128xf32, #tpu.memory_space<vmem>>, vector<128x128xf32>,
    } else {
    }
    return
  }
  func.func @transform_0(%arg0: i32, %arg1: i32, %arg2: i32) -> (i32, i32) {
    %c0_i32 = arith.constant 0 : i32
    return %arg0, %arg2 : i32, i32
  }
  func.func @transform_1(%arg0: i32, %arg1: i32, %arg2: i32) -> (i32, i32) {
    %c0_i32 = arith.constant 0 : i32
    return %arg2, %arg1 : i32, i32
  }
  func.func @transform_2(%arg0: i32, %arg1: i32, %arg2: i32) -> (i32, i32) {
    %c0_i32 = arith.constant 0 : i32
    %c0_i32_0 = arith.constant 0 : i32
    return %c0_i32, %arg1 : i32, i32
  }
  func.func @transform_3(%arg0: i32, %arg1: i32, %arg2: i32) -> (i32, i32) {
    %c0_i32 = arith.constant 0 : i32
    return %arg0, %arg1 : i32, i32
  }
}

module attributes {stable_mosaic.version = 11 : i64} {
  func.func @_residual_sft_kernel(%arg0: i32, %arg1: memref<64x512xf32, #tpu.memory_space<vmem>>, %arg2: memref<64x512xf32, #tpu.memory_space<vmem>>, %arg3: memref<64x512xf32, #tpu.memory_space<vmem>>, %arg4: memref<64x512xf32, #tpu.memory_space<vmem>>, %arg5: memref<64x512xf32, #tpu.memory_space<vmem>>) attributes {dimension_semantics = [#tpu.dimension_semantics<parallel>], iteration_bounds = array<i64: 1>, scalar_prefetch = 0 : i64, scratch_operands = 0 : i64, tpu.core_type = #tpu.core_type<tc>, window_params = [{transform_indices = @transform_0, window_bounds = array<i64: 64, 512>}, {transform_indices = @transform_1, window_bounds = array<i64: 64, 512>}, {transform_indices = @transform_2, window_bounds = array<i64: 64, 512>}, {transform_indices = @transform_3, window_bounds = array<i64: 64, 512>}, {transform_indices = @transform_4, window_bounds = array<i64: 64, 512>}]} {
    %c0 = arith.constant 0 : index
    %c0_0 = arith.constant 0 : index
    %0 = vector.load %arg1[%c0, %c0_0] : memref<64x512xf32, #tpu.memory_space<vmem>>, vector<64x512xf32>
    %c0_1 = arith.constant 0 : index
    %c0_2 = arith.constant 0 : index
    %1 = vector.load %arg2[%c0_1, %c0_2] : memref<64x512xf32, #tpu.memory_space<vmem>>, vector<64x512xf32>
    %2 = arith.addf %0, %1 : vector<64x512xf32>
    %c0_3 = arith.constant 0 : index
    %c0_4 = arith.constant 0 : index
    %3 = vector.load %arg3[%c0_3, %c0_4] : memref<64x512xf32, #tpu.memory_space<vmem>>, vector<64x512xf32>
    %4 = arith.mulf %0, %3 : vector<64x512xf32>
    %5 = arith.addf %2, %4 : vector<64x512xf32>
    %c0_5 = arith.constant 0 : index
    %c0_6 = arith.constant 0 : index
    %6 = vector.load %arg4[%c0_5, %c0_6] : memref<64x512xf32, #tpu.memory_space<vmem>>, vector<64x512xf32>
    %7 = arith.addf %5, %6 : vector<64x512xf32>
    %c0_7 = arith.constant 0 : index
    %c0_8 = arith.constant 0 : index
    %8 = vector.load %arg5[%c0_7, %c0_8] : memref<64x512xf32, #tpu.memory_space<vmem>>, vector<64x512xf32>
    tpu.vector_store %arg5[%c0_7, %c0_8], %7 {strides = array<i32>} : memref<64x512xf32, #tpu.memory_space<vmem>>, vector<64x512xf32>,
    return
  }
  func.func @transform_0(%arg0: i32) -> (i32, i32) {
    %c0_i32 = arith.constant 0 : i32
    %c0_i32_0 = arith.constant 0 : i32
    return %arg0, %c0_i32 : i32, i32
  }
  func.func @transform_1(%arg0: i32) -> (i32, i32) {
    %c0_i32 = arith.constant 0 : i32
    %c0_i32_0 = arith.constant 0 : i32
    return %arg0, %c0_i32 : i32, i32
  }
  func.func @transform_2(%arg0: i32) -> (i32, i32) {
    %c0_i32 = arith.constant 0 : i32
    %c0_i32_0 = arith.constant 0 : i32
    return %arg0, %c0_i32 : i32, i32
  }
  func.func @transform_3(%arg0: i32) -> (i32, i32) {
    %c0_i32 = arith.constant 0 : i32
    %c0_i32_0 = arith.constant 0 : i32
    return %arg0, %c0_i32 : i32, i32
  }
  func.func @transform_4(%arg0: i32) -> (i32, i32) {
    %c0_i32 = arith.constant 0 : i32
    %c0_i32_0 = arith.constant 0 : i32
    return %arg0, %c0_i32 : i32, i32
  }
}

</mosaic_0001>

<bundles_post_ra>
// kernel: minildb_forward.5
= control target key start
LH: loop header
LB: loop body
LE: loop exit
PB: predicated region body
PF: predicated region fallthrough
CT: control target
= control target key end

     0   :  { %s1539_s12 = smov 0   ;;  %s1541_s13 = smov 0   ;;  %s1850_s0 = inlined_call_operand.vmem [shape: bf16[512,1152], index: 0, kind: input, shape index: {}]   ;;  %s1851_s1 = inlined_call_operand.vmem [shape: bf16[1152,128], index: 1, kind: input, shape index: {}]   ;;  %s1852_s2 = inlined_call_operand.vmem [shape: f32[1,128], index: 2, kind: input, shape index: {}]   ;;  %s1853_s3 = inlined_call_operand.vmem [shape: f32[512,128], index: 3, kind: output, shape index: {}]  }
   0x1   :  { %s1543_s14 = smov 0   ;;  %s1545_s15 = smov 0  }
   0x2   :  { %s1547_s16 = smov 0   ;;  %s1549_s17 = smov 0  }
   0x3   :  { %s1551_s18 = smov 0  }
   0x4 LB: > { %s25_s19 = sadd.s32 1, %s1508_s16  ;;  %s32_s20 = sadd.s32 1, %s1512_s17  ;;  %s1516_s18 = sphi %s1551_s18, %s13_s18   ;;  %s1512_s17 = sphi %s1549_s17, %s1859_s17   ;;  %s1508_s16 = sphi %s1547_s16, %s1858_s16   ;;  %s1504_s15 = sphi %s1545_s15, %s1857_s15   ;;  %s1500_s14 = sphi %s1543_s14, %s1856_s14   ;;  %s1496_s13 = sphi %s1541_s13, %s1855_s13   ;;  %s1492_s12 = sphi %s1539_s12, %s1854_s12  }
   0x5   : > { %p26_p0 = scmp.ge.s32.totalorder %s25_s19, 3  ;;  %p48_p1 = scmp.ne.s32.totalorder %s1496_s13, %s1492_s12 }
   0x6   : > { %p49_p2 = scmp.eq.s32.totalorder %s1516_s18, 0  ;;  %s41_s24 = sadd.s32 1, %s1496_s13 }
   0x7   : > { %s1861_s19 = smov (%p26_p0, %s25_s19), 0  ;;  %s1863_s20 = smov (!%p26_p0, %s32_s20), %s1512_s17 }
   0x8   : > { %p50_p3 = por %p49_p2, %p48_p1  ;;  %p34_p4 = scmp.ge.s32.totalorder %s1863_s20, 4 }
   0x9   : > { %s37_s21 = ssub.s32 %s1508_s16, %s1861_s19  ;;  %p1093_p6 = scmp.ge.s32.totalorder %s1516_s18, 12 }
   0xa   : > { %s1865_s20 = smov (%p34_p4, %s1863_s20), 0 }
   0xb   : > { %s36_s22 = ssub.s32 %s1512_s17, %s1865_s20  ;;  %162 = sbr.rel (%p1093_p6) target bundleno = 57 (0x39), region = 20 }
   0xc   : > { %s38_s23 = sor.u32 %s37_s21, %s36_s22 }
   0xd   : > { %p39_p5 = scmp.eq.s32.totalorder %s38_s23, 0 }
   0xf   : > { %s1590_s25 = scalar_select %p39_p5, %s1496_s13, %s41_s24  }
  0x10   : > { %165 = sbr.rel (!%p50_p3) target bundleno = 57 (0x39), region = 24  ;;  %s167_s26 = sand.u32 (%p50_p3), 1, %s1496_s13  }
  0x11   : > { %s171_s27 = smul.u32 (%p50_p3), 3, %s1508_s16 }
  0x12   : > { %s1401_s28 = smul.u32 (%p50_p3), 192, %s167_s26 }
  0x13   : > { %s1402_s29 = smul.u32 (%p50_p3), 144, %s1512_s17 }
  0x14   : > { %s1604_s8 = scalar_lea.vmem (%p50_p3), [#allocation3], %s1401_s28 }
  0x15   : > { %s173_s30 = sadd.s32 %s1402_s29, %s171_s27 }
  0x16   : > { %s1096_s4 = sshll.u32 %s173_s30, 2 }
  0x17   : > { %s1599_s7 = scalar_lea.vmem %s1850_s0, %s1096_s4 }
  0x18   : > { %v190_v0 = vld [vmem:[%s1599_s7] sm:$0xff]  ;;  %v194_v2 = vld [vmem:[%s1599_s7 + $0x48] sm:$0xff]  ;;  %v198_v4 = vld [vmem:[%s1599_s7 + $0x90] sm:$0xff] }
  0x19   : > { %v192_v1 = vld [vmem:[%s1599_s7 + $0x24] sm:$0xff]  ;;  %191 = vst [vmem:[%s1604_s8] sm:$0xff] %v190_v0  ;;  %v196_v3 = vld [vmem:[%s1599_s7 + $0x6c] sm:$0xff]  ;;  %v200_v5 = vld [vmem:[%s1599_s7 + $0xb4] sm:$0xff] }
  0x1a   : > { %193 = vst [vmem:[%s1604_s8 + $0xc] sm:$0xff] %v192_v1  ;;  %v202_v6 = vld [vmem:[%s1599_s7 + $0xd8] sm:$0xff]  ;;  %v206_v8 = vld [vmem:[%s1599_s7 + $0x120] sm:$0xff]  ;;  %v210_v10 = vld [vmem:[%s1599_s7 + $0x168] sm:$0xff] }
  0x1b   : > { %195 = vst [vmem:[%s1604_s8 + $0x18] sm:$0xff] %v194_v2  ;;  %v204_v7 = vld [vmem:[%s1599_s7 + $0xfc] sm:$0xff]  ;;  %v208_v9 = vld [vmem:[%s1599_s7 + $0x144] sm:$0xff]  ;;  %v212_v11 = vld [vmem:[%s1599_s7 + $0x18c] sm:$0xff] }
  0x1c   : > { %197 = vst [vmem:[%s1604_s8 + $0x24] sm:$0xff] %v196_v3  ;;  %v214_v12 = vld [vmem:[%s1599_s7 + $0x1b0] sm:$0xff]  ;;  %v218_v14 = vld [vmem:[%s1599_s7 + $0x1f8] sm:$0xff]  ;;  %v1097_v16 = vld [vmem:[%s1599_s7 + $0x8] sm:$0xf] }
  0x1d   : > { %199 = vst [vmem:[%s1604_s8 + $0x30] sm:$0xff] %v198_v4  ;;  %v216_v13 = vld [vmem:[%s1599_s7 + $0x1d4] sm:$0xff]  ;;  %v220_v15 = vld [vmem:[%s1599_s7 + $0x21c] sm:$0xff]  ;;  %v1099_v17 = vld [vmem:[%s1599_s7 + $0x2c] sm:$0xf] }
  0x1e   : > { %201 = vst [vmem:[%s1604_s8 + $0x3c] sm:$0xff] %v200_v5  ;;  %v1101_v18 = vld [vmem:[%s1599_s7 + $0x50] sm:$0xf]  ;;  %v1103_v19 = vld [vmem:[%s1599_s7 + $0x74] sm:$0xf] }
  0x1f   : > { %203 = vst [vmem:[%s1604_s8 + $0x48] sm:$0xff] %v202_v6  ;;  %v1105_v20 = vld [vmem:[%s1599_s7 + $0x98] sm:$0xf]  ;;  %v1107_v21 = vld [vmem:[%s1599_s7 + $0xbc] sm:$0xf] }
  0x20   : > { %205 = vst [vmem:[%s1604_s8 + $0x54] sm:$0xff] %v204_v7  ;;  %v1109_v22 = vld [vmem:[%s1599_s7 + $0xe0] sm:$0xf]  ;;  %v1111_v23 = vld [vmem:[%s1599_s7 + $0x104] sm:$0xf] }
  0x21   : > { %207 = vst [vmem:[%s1604_s8 + $0x60] sm:$0xff] %v206_v8  ;;  %v1113_v24 = vld [vmem:[%s1599_s7 + $0x128] sm:$0xf]  ;;  %v1115_v25 = vld [vmem:[%s1599_s7 + $0x14c] sm:$0xf] }
  0x22   : > { %209 = vst [vmem:[%s1604_s8 + $0x6c] sm:$0xff] %v208_v9  ;;  %v1117_v26 = vld [vmem:[%s1599_s7 + $0x170] sm:$0xf]  ;;  %v1119_v27 = vld [vmem:[%s1599_s7 + $0x194] sm:$0xf] }
  0x23   : > { %211 = vst [vmem:[%s1604_s8 + $0x78] sm:$0xff] %v210_v10  ;;  %v1121_v28 = vld [vmem:[%s1599_s7 + $0x1b8] sm:$0xf]  ;;  %v1123_v29 = vld [vmem:[%s1599_s7 + $0x1dc] sm:$0xf] }
  0x24   : > { %213 = vst [vmem:[%s1604_s8 + $0x84] sm:$0xff] %v212_v11  ;;  %v1125_v30 = vld [vmem:[%s1599_s7 + $0x200] sm:$0xf]  ;;  %v1127_v31 = vld [vmem:[%s1599_s7 + $0x224] sm:$0xf] }
  0x25   : > { %215 = vst [vmem:[%s1604_s8 + $0x90] sm:$0xff] %v214_v12 }
  0x26   : > { %217 = vst [vmem:[%s1604_s8 + $0x9c] sm:$0xff] %v216_v13 }
  0x27   : > { %219 = vst [vmem:[%s1604_s8 + $0xa8] sm:$0xff] %v218_v14 }
  0x28   : > { %221 = vst [vmem:[%s1604_s8 + $0xb4] sm:$0xff] %v220_v15 }
  0x29   : > { %1098 = vst [vmem:[%s1604_s8 + $0x8] sm:$0xf] %v1097_v16 }
  0x2a   : > { %1100 = vst [vmem:[%s1604_s8 + $0x14] sm:$0xf] %v1099_v17 }
  0x2b   : > { %1102 = vst [vmem:[%s1604_s8 + $0x20] sm:$0xf] %v1101_v18 }
  0x2c   : > { %1104 = vst [vmem:[%s1604_s8 + $0x2c] sm:$0xf] %v1103_v19 }
  0x2d   : > { %1106 = vst [vmem:[%s1604_s8 + $0x38] sm:$0xf] %v1105_v20 }
  0x2e   : > { %1108 = vst [vmem:[%s1604_s8 + $0x44] sm:$0xf] %v1107_v21 }
  0x2f   : > { %1110 = vst [vmem:[%s1604_s8 + $0x50] sm:$0xf] %v1109_v22 }
  0x30   : > { %1112 = vst [vmem:[%s1604_s8 + $0x5c] sm:$0xf] %v1111_v23 }
  0x31   : > { %1114 = vst [vmem:[%s1604_s8 + $0x68] sm:$0xf] %v1113_v24 }
  0x32   : > { %1116 = vst [vmem:[%s1604_s8 + $0x74] sm:$0xf] %v1115_v25 }
  0x33   : > { %1118 = vst [vmem:[%s1604_s8 + $0x80] sm:$0xf] %v1117_v26 }
  0x34   : > { %1120 = vst [vmem:[%s1604_s8 + $0x8c] sm:$0xf] %v1119_v27 }
  0x35   : > { %1122 = vst [vmem:[%s1604_s8 + $0x98] sm:$0xf] %v1121_v28 }
  0x36   : > { %1124 = vst [vmem:[%s1604_s8 + $0xa4] sm:$0xf] %v1123_v29 }
  0x37   : > { %1126 = vst [vmem:[%s1604_s8 + $0xb0] sm:$0xf] %v1125_v30 }
  0x38   : > { %1128 = vst [vmem:[%s1604_s8 + $0xbc] sm:$0xf] %v1127_v31 }
  0x39 PF: > { %p1129_p7 = scmp.ge.s32.totalorder %s1516_s18, 1  ;;  %p278_p8 = scmp.lt.s32.totalorder %s1516_s18, 13 }
  0x3b   : > { %p279_p9 = pnand %p1129_p7, %p278_p8 }
  0x3c   : > { %s285_s9 = sand.u32 (!%p279_p9), 1, %s1492_s12   ;;  %s324_s10 = smul.u32 (!%p279_p9), 48, %s1500_s14 }
  0x3d   : > { %282 = sbr.rel (%p279_p9) target bundleno = 369 (0x171), region = 54  ;;  %s1131_s21 = sshll.u32 (!%p279_p9), %s1504_s15, 4 }
  0x3e   : > { %s1403_s11 = smul.u32 (!%p279_p9), 192, %s285_s9  ;;  %p325_p10 = scmp.lt.s32.totalorder (!%p279_p9), %s324_s10, 143 }
  0x3f   : > { %p337_p11 = scmp.lt.s32.totalorder (!%p279_p9), %s1131_s21, 63  ;;  %p1133_p12 = scmp.ne.s32.totalorder (!%p279_p9), %s1500_s14, 0 }
  0x40   : > { %s1682_s12 = scalar_lea.vmem (!%p279_p9), [#allocation3], %s1403_s11 }
  0x42   : > { %s1867_s10 = smov (!%p325_p10, %s324_s10), 143  ;;  %s1869_s21 = smov (!%p337_p11, %s1131_s21), 63 }
  0x43   : > { %s1130_s22 = sshll.u32 %s1867_s10, 2  ;;  %s1132_s27 = sshll.u32 %s1869_s21, 3 }
  0x44   : > { %s1675_s26 = scalar_lea.vmem %s1851_s1, %s1130_s22  ;;  %s1680_s30 = scalar_lea.vmem %s1853_s3, %s1132_s27 }
  0x45   : > { %348 = sbr.rel (%p1133_p12) target bundleno = 91 (0x5b), region = 62 }
  0x4a   : > { %v1518_v32 = vmov 0.0  }
  0x4b   : > { %349 = vst [vmem:[#allocation2 + $0x30] sm:$0xff] %v1518_v32 }
  0x4c   : > { %350 = vst [vmem:[#allocation2] sm:$0xff] %v1518_v32 }
  0x4d   : > { %351 = vst [vmem:[#allocation2 + $0x58] sm:$0xff] %v1518_v32 }
  0x4e   : > { %352 = vst [vmem:[#allocation2 + $0x18] sm:$0xff] %v1518_v32 }
  0x4f   : > { %353 = vst [vmem:[#allocation2 + $0x50] sm:$0xff] %v1518_v32 }
  0x50   : > { %354 = vst [vmem:[#allocation2 + $0x68] sm:$0xff] %v1518_v32 }
  0x51   : > { %355 = vst [vmem:[#allocation2 + $0x8] sm:$0xff] %v1518_v32 }
  0x52   : > { %356 = vst [vmem:[#allocation2 + $0x48] sm:$0xff] %v1518_v32 }
  0x53   : > { %357 = vst [vmem:[#allocation2 + $0x40] sm:$0xff] %v1518_v32 }
  0x54   : > { %358 = vst [vmem:[#allocation2 + $0x20] sm:$0xff] %v1518_v32 }
  0x55   : > { %359 = vst [vmem:[#allocation2 + $0x10] sm:$0xff] %v1518_v32 }
  0x56   : > { %360 = vst [vmem:[#allocation2 + $0x38] sm:$0xff] %v1518_v32 }
  0x57   : > { %361 = vst [vmem:[#allocation2 + $0x60] sm:$0xff] %v1518_v32 }
  0x58   : > { %362 = vst [vmem:[#allocation2 + $0x70] sm:$0xff] %v1518_v32 }
  0x59   : > { %363 = vst [vmem:[#allocation2 + $0x78] sm:$0xff] %v1518_v32 }
  0x5a   : > { %364 = vst [vmem:[#allocation2 + $0x28] sm:$0xff] %v1518_v32 }
  0x5b PF: > { %v1360_v33 = vld [vmem:[%s1675_s26 + $0x38] sm:$0xff]  ;;  %v1359_v36 = vld [vmem:[%s1675_s26 + $0x30] sm:$0xff]  ;;  %v1358_v39 = vld [vmem:[%s1675_s26 + $0x28] sm:$0xff]  ;;  %p1326_p13 = scmp.ne.s32.totalorder %s1500_s14, 2 }
  0x5c   : > { %v1687_v34 = vld [vmem:[%s1675_s26 + $0x78] sm:$0xff]  ;;  %733 = vmatpush.bf16.msra.mxu0 %v1360_v33  ;;  %1377 = vmatpush.bf16.msra.mxu3 %v1360_v33  ;;  %v1696_v37 = vld [vmem:[%s1675_s26 + $0x70] sm:$0xff]  ;;  %v1366_v40 = vld [vmem:[%s1675_s26 + $0x68] sm:$0xff] }
  0x5d   : > { %v1690_v35 = vld [vmem:[%s1675_s26 + $0xb8] sm:$0xff]  ;;  %782 = vmatpush.bf16.msra.mxu1 %v1687_v34  ;;  %v1699_v38 = vld [vmem:[%s1675_s26 + $0xb0] sm:$0xff]  ;;  %v1706_v41 = vld [vmem:[%s1675_s26 + $0xa8] sm:$0xff] }
  0x5e   : > { %831 = vmatpush.bf16.msra.mxu2 %v1690_v35  ;;  %v1357_v42 = vld [vmem:[%s1675_s26 + $0x20] sm:$0xff]  ;;  %v1356_v45 = vld [vmem:[%s1675_s26 + $0x18] sm:$0xff]  ;;  %v1355_v48 = vld [vmem:[%s1675_s26 + $0x10] sm:$0xff] }
  0x5f   : > { %v1365_v43 = vld [vmem:[%s1675_s26 + $0x60] sm:$0xff]  ;;  %v1364_v46 = vld [vmem:[%s1675_s26 + $0x58] sm:$0xff]  ;;  %v1363_v49 = vld [vmem:[%s1675_s26 + $0x50] sm:$0xff] }
  0x60   : > { %734 = vmatpush.bf16.msra.mxu0 %v1359_v36  ;;  %1378 = vmatpush.bf16.msra.mxu3 %v1359_v36  ;;  %v1712_v44 = vld [vmem:[%s1675_s26 + $0xa0] sm:$0xff]  ;;  %v1718_v47 = vld [vmem:[%s1675_s26 + $0x98] sm:$0xff]  ;;  %v1724_v50 = vld [vmem:[%s1675_s26 + $0x90] sm:$0xff] }
  0x61   : > { %783 = vmatpush.bf16.msra.mxu1 %v1696_v37  ;;  %v1354_v51 = vld [vmem:[%s1675_s26 + $0x8] sm:$0xff]  ;;  %v1353_v54 = vld [vmem:[%s1675_s26] sm:$0xff]  ;;  %v1208_v59 = vld [vmem:[%s1682_s12 + $0x90] sm:$0xf] }
  0x62   : > { %832 = vmatpush.bf16.msra.mxu2 %v1699_v38  ;;  %v1362_v52 = vld [vmem:[%s1675_s26 + $0x48] sm:$0xff]  ;;  %v1361_v55 = vld [vmem:[%s1675_s26 + $0x40] sm:$0xff]  ;;  %v1348_v60 = vld [vmem:[%s1682_s12 + $0x98] sm:$0xf0] }
  0x63   : > { %v1730_v53 = vld [vmem:[%s1675_s26 + $0x88] sm:$0xff]  ;;  %v1735_v56 = vld [vmem:[%s1675_s26 + $0x80] sm:$0xff]  ;;  %v1138_v62 = vld [vmem:[%s1682_s12 + $0xc] sm:$0xf0]  ;;  %v1209_v2 = vor.u32 %v1348_v60, %v1208_v59 }
  0x64   : > { %735 = vmatpush.bf16.msra.mxu0 %v1358_v39  ;;  %1379 = vmatpush.bf16.msra.mxu3 %v1358_v39  ;;  %v1136_v57 = vld [vmem:[%s1682_s12] sm:$0xf]  ;;  %v1330_v58 = vld [vmem:[%s1682_s12 + $0x8] sm:$0xf0]  ;;  %v1329_v61 = vld [vmem:[%s1682_s12 + $0x4] sm:$0xf] }
  0x65   : > { %784 = vmatpush.bf16.msra.mxu1 %v1366_v40  ;;  %v1144_v63 = vld [vmem:[%s1682_s12 + $0x8] sm:$0xf]  ;;  %v1331_v0 = vld [vmem:[%s1682_s12 + $0x10] sm:$0xf0]  ;;  %v1137_v1 = vor.u32 %v1330_v58, %v1136_v57  ;;  %v1141_v3 = vor.u32 %v1329_v61, %v1138_v62  ;;  %v1148_v5 = vld [vmem:[%s1682_s12 + $0x18] sm:$0xf] }
  0x66   : > { %833 = vmatpush.bf16.msra.mxu2 %v1706_v41  ;;  %v1145_v4 = vor.u32 %v1331_v0, %v1144_v63  ;;  %v1333_v6 = vld [vmem:[%s1682_s12 + $0x20] sm:$0xf0]  ;;  %v1220_v7 = vld [vmem:[%s1682_s12 + $0xa8] sm:$0xf]  ;;  %v1351_v8 = vld [vmem:[%s1682_s12 + $0xb0] sm:$0xf0] }
  0x67   : > { %v1332_v9 = vld [vmem:[%s1682_s12 + $0x1c] sm:$0xf]  ;;  %v1150_v10 = vld [vmem:[%s1682_s12 + $0x24] sm:$0xf0]  ;;  %v1156_v11 = vld [vmem:[%s1682_s12 + $0x20] sm:$0xf]  ;;  %v1149_v13 = vor.u32 %v1333_v6, %v1148_v5  ;;  %v1221_v14 = vor.u32 %v1351_v8, %v1220_v7 }
  0x68   : > { %736 = vmatpush.bf16.msra.mxu0 %v1357_v42  ;;  %1380 = vmatpush.bf16.msra.mxu3 %v1357_v42  ;;  %v1334_v12 = vld [vmem:[%s1682_s12 + $0x28] sm:$0xf0]  ;;  %v1153_v15 = vor.u32 %v1332_v9, %v1150_v10  ;;  %v1160_v17 = vld [vmem:[%s1682_s12 + $0x30] sm:$0xf]  ;;  %v1336_v18 = vld [vmem:[%s1682_s12 + $0x38] sm:$0xf0] }
  0x69   : > { %785 = vmatpush.bf16.msra.mxu1 %v1365_v43  ;;  %v1157_v16 = vor.u32 %v1334_v12, %v1156_v11  ;;  %v1335_v19 = vld [vmem:[%s1682_s12 + $0x34] sm:$0xf]  ;;  %v1210_v21 = vld [vmem:[%s1682_s12 + $0x9c] sm:$0xf0]  ;;  %v1168_v23 = vld [vmem:[%s1682_s12 + $0x38] sm:$0xf]  ;;  %v1161_v25 = vor.u32 %v1336_v18, %v1160_v17 }
  0x6a   : > { %834 = vmatpush.bf16.msra.mxu2 %v1712_v44  ;;  %v1347_v20 = vld [vmem:[%s1682_s12 + $0x94] sm:$0xf]  ;;  %v1162_v22 = vld [vmem:[%s1682_s12 + $0x3c] sm:$0xf0]  ;;  %v1337_v24 = vld [vmem:[%s1682_s12 + $0x40] sm:$0xf0] }
  0x6b   : > { %v1213_v26 = vor.u32 %v1347_v20, %v1210_v21  ;;  %v1165_v27 = vor.u32 %v1335_v19, %v1162_v22  ;;  %v1169_v28 = vor.u32 %v1337_v24, %v1168_v23  ;;  %v1172_v29 = vld [vmem:[%s1682_s12 + $0x48] sm:$0xf]  ;;  %v1339_v30 = vld [vmem:[%s1682_s12 + $0x50] sm:$0xf0]  ;;  %v1338_v31 = vld [vmem:[%s1682_s12 + $0x4c] sm:$0xf] }
  0x6c   : > { %737 = vmatpush.bf16.msra.mxu0 %v1356_v45  ;;  %1381 = vmatpush.bf16.msra.mxu3 %v1356_v45  ;;  %v1350_v32 = vld [vmem:[%s1682_s12 + $0xac] sm:$0xf]  ;;  %v1222_v33 = vld [vmem:[%s1682_s12 + $0xb4] sm:$0xf0]  ;;  %v1340_v36 = vld [vmem:[%s1682_s12 + $0x58] sm:$0xf0] }
  0x6d   : > { %786 = vmatpush.bf16.msra.mxu1 %v1364_v46  ;;  %v1225_v39 = vor.u32 %v1350_v32, %v1222_v33  ;;  %v1342_v42 = vld [vmem:[%s1682_s12 + $0x68] sm:$0xf0]  ;;  %v1349_v45 = vld [vmem:[%s1682_s12 + $0xa0] sm:$0xf0]  ;;  %v1228_v57 = vld [vmem:[%s1682_s12 + $0xb0] sm:$0xf] }
  0x6e   : > { %835 = vmatpush.bf16.msra.mxu2 %v1718_v47  ;;  %v1198_v58 = vld [vmem:[%s1682_s12 + $0x84] sm:$0xf0]  ;;  %v1204_v59 = vld [vmem:[%s1682_s12 + $0x80] sm:$0xf]  ;;  %v1346_v60 = vld [vmem:[%s1682_s12 + $0x88] sm:$0xf0] }
  0x6f   : > { %v1205_v0 = vor.u32 %v1346_v60, %v1204_v59  ;;  %v365_v5 = vld [vmem:[#allocation2 + $0x30] sm:$0xff]  ;;  %v367_v21 = vld [vmem:[#allocation2 + $0x58] sm:$0xff] }
  0x70   : > { %738 = vmatpush.bf16.msra.mxu0 %v1355_v48  ;;  %1382 = vmatpush.bf16.msra.mxu3 %v1355_v48  ;;  %v1343_v48 = vld [vmem:[%s1682_s12 + $0x70] sm:$0xf0] }
  0x71   : > { %787 = vmatpush.bf16.msra.mxu1 %v1363_v49 }
  0x72   : > { %836 = vmatpush.bf16.msra.mxu2 %v1724_v50 }
  0x74   : > { %739 = vmatpush.bf16.msra.mxu0 %v1354_v51  ;;  %1383 = vmatpush.bf16.msra.mxu3 %v1354_v51 }
  0x75   : > { %788 = vmatpush.bf16.msra.mxu1 %v1362_v52 }
  0x76   : > { %837 = vmatpush.bf16.msra.mxu2 %v1730_v53 }
  0x78   : > { %740 = vmatpush.bf16.msra.mxu0 %v1353_v54  ;;  %1384 = vmatpush.bf16.msra.mxu3 %v1353_v54  ;;  %v1345_v54 = vld [vmem:[%s1682_s12 + $0x80] sm:$0xf0] }
  0x79   : > { %789 = vmatpush.bf16.msra.mxu1 %v1361_v55 }
  0x7a   : > { %838 = vmatpush.bf16.msra.mxu2 %v1735_v56 }
  0x7b   : > { %741 = vmatmul.bf16.vlgmr.msra.gmra.mxu0 %v1137_v1  ;;  %771 = vmatmul.bf16.vlgmr.msra.gmra.mxu3 %v1209_v2 }
  0x7c   : > { %1385 = vmatpush.bf16.msrb.mxu3 %v1687_v34  ;;  %790 = vmatmul.bf16.vlgmr.msra.gmra.mxu1 %v1141_v3  ;;  %v1174_v34 = vld [vmem:[%s1682_s12 + $0x54] sm:$0xf0] }
  0x7d   : > { %839 = vmatmul.bf16.vlgmr.msra.gmra.mxu2 %v1145_v4 }
  0x80   : > { %1386 = vmatpush.bf16.msrb.mxu3 %v1696_v37  ;;  %v1173_v37 = vor.u32 %v1339_v30, %v1172_v29  ;;  %v368_v29 = vld [vmem:[#allocation2 + $0x18] sm:$0xff] }
  0x84   : > { %1387 = vmatpush.bf16.msrb.mxu3 %v1366_v40 }
  0x88   : > { %1388 = vmatpush.bf16.msrb.mxu3 %v1365_v43  ;;  %v1341_v43 = vld [vmem:[%s1682_s12 + $0x64] sm:$0xf] }
  0x8b   : > { %746 = vmatmul.bf16.gmra.mxu0 %v1149_v13  ;;  %776 = vmatmul.bf16.gmra.mxu3 %v1221_v14  ;;  %v366_v13 = vld [vmem:[#allocation2] sm:$0xff] }
  0x8c   : > { %1389 = vmatpush.bf16.msrb.mxu3 %v1364_v46  ;;  %795 = vmatmul.bf16.gmra.mxu1 %v1153_v15  ;;  %v1186_v46 = vld [vmem:[%s1682_s12 + $0x6c] sm:$0xf0] }
  0x8d   : > { %844 = vmatmul.bf16.gmra.mxu2 %v1157_v16  ;;  %v1189_v51 = vor.u32 %v1341_v43, %v1186_v46 }
  0x90   : > { %1390 = vmatpush.bf16.msrb.mxu3 %v1363_v49 }
  0x94   : > { %1391 = vmatpush.bf16.msrb.mxu3 %v1362_v52 }
  0x98   : > { %1392 = vmatpush.bf16.msrb.mxu3 %v1361_v55  ;;  %v1344_v55 = vld [vmem:[%s1682_s12 + $0x7c] sm:$0xf] }
  0x99   : > { %v1201_v63 = vor.u32 %v1344_v55, %v1198_v58 }
  0x9b   : > { %751 = vmatmul.bf16.gmra.mxu0 %v1161_v25  ;;  %820 = vmatmul.bf16.vlgmr.msrb.gmra.mxu3 %v1213_v26 }
  0x9c   : > { %1393 = vmatpush.bf16.msra.mxu3 %v1690_v35  ;;  %800 = vmatmul.bf16.gmra.mxu1 %v1165_v27  ;;  %v1180_v35 = vld [vmem:[%s1682_s12 + $0x50] sm:$0xf] }
  0x9d   : > { %849 = vmatmul.bf16.gmra.mxu2 %v1169_v28  ;;  %v1181_v40 = vor.u32 %v1340_v36, %v1180_v35 }
  0xa0   : > { %1394 = vmatpush.bf16.msra.mxu3 %v1699_v38  ;;  %v1177_v38 = vor.u32 %v1338_v31, %v1174_v34 }
  0xa4   : > { %1395 = vmatpush.bf16.msra.mxu3 %v1706_v41  ;;  %v1184_v41 = vld [vmem:[%s1682_s12 + $0x60] sm:$0xf] }
  0xa5   : > { %v1185_v49 = vor.u32 %v1342_v42, %v1184_v41 }
  0xa8   : > { %1396 = vmatpush.bf16.msra.mxu3 %v1712_v44  ;;  %v1216_v44 = vld [vmem:[%s1682_s12 + $0x98] sm:$0xf] }
  0xab   : > { %756 = vmatmul.bf16.gmra.mxu0 %v1173_v37  ;;  %825 = vmatmul.bf16.gmra.mxu3 %v1225_v39  ;;  %v369_v37 = vld [vmem:[#allocation2 + $0x50] sm:$0xff] }
  0xac   : > { %1397 = vmatpush.bf16.msra.mxu3 %v1718_v47  ;;  %805 = vmatmul.bf16.gmra.mxu1 %v1177_v38  ;;  %v1192_v47 = vld [vmem:[%s1682_s12 + $0x68] sm:$0xf] }
  0xad   : > { %854 = vmatmul.bf16.gmra.mxu2 %v1181_v40  ;;  %v1193_v52 = vor.u32 %v1343_v48, %v1192_v47 }
  0xb0   : > { %1398 = vmatpush.bf16.msra.mxu3 %v1724_v50  ;;  %v1217_v50 = vor.u32 %v1349_v45, %v1216_v44  ;;  %v370_v45 = vld [vmem:[#allocation2 + $0x68] sm:$0xff] }
  0xb4   : > { %1399 = vmatpush.bf16.msra.mxu3 %v1730_v53  ;;  %v1196_v53 = vld [vmem:[%s1682_s12 + $0x78] sm:$0xf] }
  0xb5   : > { %v1197_v61 = vor.u32 %v1345_v54, %v1196_v53  ;;  %v371_v53 = vld [vmem:[#allocation2 + $0x8] sm:$0xff] }
  0xb8   : > { %1400 = vmatpush.bf16.msra.mxu3 %v1735_v56  ;;  %v1352_v56 = vld [vmem:[%s1682_s12 + $0xb8] sm:$0xf0] }
  0xb9   : > { %v1229_v62 = vor.u32 %v1352_v56, %v1228_v57 }
  0xbb   : > { %761 = vmatmul.bf16.gmra.mxu0 %v1185_v49  ;;  %869 = vmatmul.bf16.vlgmr.msra.gmra.mxu3 %v1217_v50 }
  0xbc   : > { %810 = vmatmul.bf16.gmra.mxu1 %v1189_v51 }
  0xbd   : > { %859 = vmatmul.bf16.gmra.mxu2 %v1193_v52 }
  0xcb   : > { %766 = vmatmul.bf16.gmra.mxu0 %v1197_v61  ;;  %874 = vmatmul.bf16.gmra.mxu3 %v1229_v62  ;;  %v372_v61 = vld [vmem:[#allocation2 + $0x48] sm:$0xff] }
  0xcc   : > { %815 = vmatmul.bf16.gmra.mxu1 %v1201_v63 }
  0xcd   : > { %864 = vmatmul.bf16.gmra.mxu2 %v1205_v0 }
  0xf8   : > { %v742_v1 = vpop.f32.mrf.mxu0 }
  0xf9   : > { %v791_v2 = vpop.f32.mrf.mxu1 }
  0xfa   : > { %v792_v3 = vadd.f32 %v791_v2, %v742_v1 }
  0xfe   : > { %v1797_v4 = vpop.f32.mrf.mxu3 }
 0x100   : > { %v840_v6 = vpop.f32.mrf.mxu2  ;;  %v744_v8 = vpop.f32.mrf.mxu0 }
 0x101   : > { %v841_v7 = vadd.f32 %v840_v6, %v792_v3  ;;  %v793_v9 = vpop.f32.mrf.mxu1  ;;  %v377_v6 = vld [vmem:[#allocation2 + $0x60] sm:$0xff] }
 0x102   : > { %v794_v11 = vadd.f32 %v793_v9, %v744_v8  ;;  %v373_v8 = vld [vmem:[#allocation2 + $0x40] sm:$0xff] }
 0x103   : > { %v880_v10 = vadd.f32 %v841_v7, %v365_v5 }
 0x105   : > { %896 = vst [vmem:[#allocation2 + $0x30] sm:$0xff] %v880_v10 }
 0x106   : > { %v1799_v12 = vpop.f32.mrf.mxu3 }
 0x108   : > { %v842_v14 = vpop.f32.mrf.mxu2  ;;  %v747_v16 = vpop.f32.mrf.mxu0 }
 0x109   : > { %v843_v15 = vadd.f32 %v842_v14, %v794_v11  ;;  %v796_v17 = vpop.f32.mrf.mxu1 }
 0x10a   : > { %v797_v19 = vadd.f32 %v796_v17, %v747_v16 }
 0x10b   : > { %v881_v18 = vadd.f32 %v843_v15, %v366_v13 }
 0x10d   : > { %897 = vst [vmem:[#allocation2] sm:$0xff] %v881_v18 }
 0x10e   : > { %v1801_v20 = vpop.f32.mrf.mxu3 }
 0x110   : > { %v845_v22 = vpop.f32.mrf.mxu2  ;;  %v749_v24 = vpop.f32.mrf.mxu0 }
 0x111   : > { %v846_v23 = vadd.f32 %v845_v22, %v797_v19  ;;  %v798_v25 = vpop.f32.mrf.mxu1  ;;  %v378_v19 = vld [vmem:[#allocation2 + $0x70] sm:$0xff]  ;;  %v374_v22 = vld [vmem:[#allocation2 + $0x20] sm:$0xff] }
 0x112   : > { %v799_v27 = vadd.f32 %v798_v25, %v749_v24 }
 0x113   : > { %v882_v26 = vadd.f32 %v846_v23, %v367_v21 }
 0x115   : > { %898 = vst [vmem:[#allocation2 + $0x58] sm:$0xff] %v882_v26 }
 0x116   : > { %v1803_v28 = vpop.f32.mrf.mxu3 }
 0x118   : > { %v847_v30 = vpop.f32.mrf.mxu2  ;;  %v752_v32 = vpop.f32.mrf.mxu0 }
 0x119   : > { %v848_v31 = vadd.f32 %v847_v30, %v799_v27  ;;  %v801_v33 = vpop.f32.mrf.mxu1 }
 0x11a   : > { %v802_v35 = vadd.f32 %v801_v33, %v752_v32  ;;  %v379_v32 = vld [vmem:[#allocation2 + $0x78] sm:$0xff] }
 0x11b   : > { %v883_v34 = vadd.f32 %v848_v31, %v368_v29 }
 0x11d   : > { %899 = vst [vmem:[#allocation2 + $0x18] sm:$0xff] %v883_v34  ;;  %v375_v34 = vld [vmem:[#allocation2 + $0x10] sm:$0xff] }
 0x11e   : > { %v821_v36 = vpop.f32.mrf.mxu3 }
 0x11f   : > { %v822_v5 = vadd.f32 %v821_v36, %v1797_v4 }
 0x120   : > { %v850_v39 = vpop.f32.mrf.mxu2  ;;  %v754_v40 = vpop.f32.mrf.mxu0 }
 0x121   : > { %v851_v38 = vadd.f32 %v850_v39, %v802_v35  ;;  %v803_v41 = vpop.f32.mrf.mxu1 }
 0x122   : > { %v804_v43 = vadd.f32 %v803_v41, %v754_v40 }
 0x123   : > { %v884_v42 = vadd.f32 %v851_v38, %v369_v37 }
 0x125   : > { %900 = vst [vmem:[#allocation2 + $0x50] sm:$0xff] %v884_v42 }
 0x126   : > { %v823_v44 = vpop.f32.mrf.mxu3 }
 0x127   : > { %v824_v17 = vadd.f32 %v823_v44, %v1799_v12 }
 0x128   : > { %v852_v46 = vpop.f32.mrf.mxu2  ;;  %v757_v48 = vpop.f32.mrf.mxu0 }
 0x129   : > { %v853_v47 = vadd.f32 %v852_v46, %v804_v43  ;;  %v806_v49 = vpop.f32.mrf.mxu1  ;;  %v380_v43 = vld [vmem:[#allocation2 + $0x28] sm:$0xff] }
 0x12a   : > { %v807_v51 = vadd.f32 %v806_v49, %v757_v48 }
 0x12b   : > { %v885_v50 = vadd.f32 %v853_v47, %v370_v45  ;;  %v376_v45 = vld [vmem:[#allocation2 + $0x38] sm:$0xff] }
 0x12d   : > { %901 = vst [vmem:[#allocation2 + $0x68] sm:$0xff] %v885_v50 }
 0x12e   : > { %v826_v52 = vpop.f32.mrf.mxu3 }
 0x12f   : > { %v827_v31 = vadd.f32 %v826_v52, %v1801_v20 }
 0x130   : > { %v855_v54 = vpop.f32.mrf.mxu2  ;;  %v759_v57 = vpop.f32.mrf.mxu0 }
 0x131   : > { %v856_v55 = vadd.f32 %v855_v54, %v807_v51  ;;  %v808_v56 = vpop.f32.mrf.mxu1 }
 0x132   : > { %v809_v59 = vadd.f32 %v808_v56, %v759_v57 }
 0x133   : > { %v886_v58 = vadd.f32 %v856_v55, %v371_v53 }
 0x135   : > { %902 = vst [vmem:[#allocation2 + $0x8] sm:$0xff] %v886_v58 }
 0x136   : > { %v828_v60 = vpop.f32.mrf.mxu3 }
 0x137   : > { %v829_v41 = vadd.f32 %v828_v60, %v1803_v28 }
 0x138   : > { %v857_v62 = vpop.f32.mrf.mxu2  ;;  %v762_v0 = vpop.f32.mrf.mxu0 }
 0x139   : > { %v858_v63 = vadd.f32 %v857_v62, %v809_v59  ;;  %v811_v1 = vpop.f32.mrf.mxu1 }
 0x13a   : > { %v812_v3 = vadd.f32 %v811_v1, %v762_v0 }
 0x13b   : > { %v887_v2 = vadd.f32 %v858_v63, %v372_v61 }
 0x13d   : > { %903 = vst [vmem:[#allocation2 + $0x48] sm:$0xff] %v887_v2 }
 0x13e   : > { %v870_v7 = vpop.f32.mrf.mxu3 }
 0x13f   : > { %v871_v10 = vadd.f32 %v870_v7, %v822_v5 }
 0x140   : > { %v860_v9 = vpop.f32.mrf.mxu2  ;;  %v764_v13 = vpop.f32.mrf.mxu0 }
 0x141   : > { %v861_v11 = vadd.f32 %v860_v9, %v812_v3  ;;  %v892_v14 = vadd.f32 %v871_v10, %v377_v6  ;;  %v813_v15 = vpop.f32.mrf.mxu1 }
 0x142   : > { %v814_v18 = vadd.f32 %v813_v15, %v764_v13 }
 0x143   : > { %v888_v16 = vadd.f32 %v861_v11, %v373_v8  ;;  %908 = vst [vmem:[#allocation2 + $0x60] sm:$0xff] %v892_v14 }
 0x145   : > { %904 = vst [vmem:[#allocation2 + $0x40] sm:$0xff] %v888_v16 }
 0x146   : > { %v872_v21 = vpop.f32.mrf.mxu3 }
 0x147   : > { %v873_v4 = vadd.f32 %v872_v21, %v824_v17 }
 0x148   : > { %v862_v23 = vpop.f32.mrf.mxu2  ;;  %v767_v26 = vpop.f32.mrf.mxu0 }
 0x149   : > { %v863_v24 = vadd.f32 %v862_v23, %v814_v18  ;;  %v893_v25 = vadd.f32 %v873_v4, %v378_v19  ;;  %v816_v27 = vpop.f32.mrf.mxu1 }
 0x14a   : > { %v817_v30 = vadd.f32 %v816_v27, %v767_v26 }
 0x14b   : > { %v889_v29 = vadd.f32 %v863_v24, %v374_v22  ;;  %909 = vst [vmem:[#allocation2 + $0x70] sm:$0xff] %v893_v25 }
 0x14d   : > { %905 = vst [vmem:[#allocation2 + $0x20] sm:$0xff] %v889_v29 }
 0x14e   : > { %v875_v33 = vpop.f32.mrf.mxu3 }
 0x14f   : > { %v876_v35 = vadd.f32 %v875_v33, %v827_v31 }
 0x150   : > { %v865_v12 = vpop.f32.mrf.mxu2  ;;  %v769_v38 = vpop.f32.mrf.mxu0 }
 0x151   : > { %v866_v36 = vadd.f32 %v865_v12, %v817_v30  ;;  %v894_v37 = vadd.f32 %v876_v35, %v379_v32  ;;  %v818_v40 = vpop.f32.mrf.mxu1 }
 0x152   : > { %v819_v42 = vadd.f32 %v818_v40, %v769_v38 }
 0x153   : > { %v890_v39 = vadd.f32 %v866_v36, %v375_v34  ;;  %910 = vst [vmem:[#allocation2 + $0x78] sm:$0xff] %v894_v37 }
 0x155   : > { %906 = vst [vmem:[#allocation2 + $0x10] sm:$0xff] %v890_v39 }
 0x156   : > { %v877_v44 = vpop.f32.mrf.mxu3 }
 0x157   : > { %v878_v20 = vadd.f32 %v877_v44, %v829_v41 }
 0x158   : > { %v867_v46 = vpop.f32.mrf.mxu2 }
 0x159   : > { %v868_v47 = vadd.f32 %v867_v46, %v819_v42  ;;  %v895_v48 = vadd.f32 %v878_v20, %v380_v43  ;;  %915 = sbr.rel (%p1326_p13) target bundleno = 369 (0x171), region = 66 }
 0x15b   : > { %v891_v49 = vadd.f32 %v868_v47, %v376_v45  ;;  %911 = vst [vmem:[#allocation2 + $0x28] sm:$0xff] %v895_v48 }
 0x15d   : > { %907 = vst [vmem:[#allocation2 + $0x38] sm:$0xff] %v891_v49 }
 0x15e   : > { %v916_v50 = vld [vmem:[#allocation2 + $0x30] sm:$0xff]  ;;  %v1461_v28 = vld [vmem:[%s1852_s2] ss:$0 sm:$0xff]  ;;  %v918_v52 = vld [vmem:[#allocation2 + $0x58] sm:$0xff] }
 0x15f   : > { %v917_v51 = vld [vmem:[#allocation2] sm:$0xff]  ;;  %v919_v53 = vld [vmem:[#allocation2 + $0x18] sm:$0xff]  ;;  %v936_v54 = vadd.f32 %v1461_v28, %v916_v50  ;;  %v938_v57 = vadd.f32 %v1461_v28, %v918_v52  ;;  %v920_v56 = vld [vmem:[#allocation2 + $0x50] sm:$0xff] }
 0x160   : > { %v937_v55 = vadd.f32 %v1461_v28, %v917_v51  ;;  %v921_v58 = vld [vmem:[#allocation2 + $0x68] sm:$0xff]  ;;  %v939_v59 = vadd.f32 %v1461_v28, %v919_v53  ;;  %v940_v61 = vadd.f32 %v1461_v28, %v920_v56  ;;  %v924_v0 = vld [vmem:[#allocation2 + $0x40] sm:$0xff]  ;;  %v926_v5 = vld [vmem:[#allocation2 + $0x10] sm:$0xff] }
 0x161   : > { %v922_v60 = vld [vmem:[#allocation2 + $0x8] sm:$0xff]  ;;  %952 = vst [vmem:[%s1680_s30] sm:$0xff] %v936_v54  ;;  %v941_v63 = vadd.f32 %v1461_v28, %v921_v58  ;;  %v925_v2 = vld [vmem:[#allocation2 + $0x20] sm:$0xff]  ;;  %v944_v6 = vadd.f32 %v1461_v28, %v924_v0  ;;  %v946_v10 = vadd.f32 %v1461_v28, %v926_v5  ;;  %v929_v11 = vld [vmem:[#allocation2 + $0x70] sm:$0xff] }
 0x162   : > { %v923_v62 = vld [vmem:[#allocation2 + $0x48] sm:$0xff]  ;;  %953 = vst [vmem:[%s1680_s30 + $0x8] sm:$0xff] %v937_v55  ;;  %v942_v1 = vadd.f32 %v1461_v28, %v922_v60  ;;  %v945_v8 = vadd.f32 %v1461_v28, %v925_v2  ;;  %v928_v9 = vld [vmem:[#allocation2 + $0x60] sm:$0xff]  ;;  %v930_v14 = vld [vmem:[#allocation2 + $0x78] sm:$0xff]  ;;  %v949_v17 = vadd.f32 %v1461_v28, %v929_v11 }
 0x163   : > { %954 = vst [vmem:[%s1680_s30 + $0x10] sm:$0xff] %v938_v57  ;;  %v943_v3 = vadd.f32 %v1461_v28, %v923_v62  ;;  %v948_v15 = vadd.f32 %v1461_v28, %v928_v9  ;;  %v931_v16 = vld [vmem:[#allocation2 + $0x28] sm:$0xff]  ;;  %v950_v18 = vadd.f32 %v1461_v28, %v930_v14 }
 0x164   : > { %955 = vst [vmem:[%s1680_s30 + $0x18] sm:$0xff] %v939_v59  ;;  %v927_v7 = vld [vmem:[#allocation2 + $0x38] sm:$0xff]  ;;  %v951_v19 = vadd.f32 %v1461_v28, %v931_v16 }
 0x165   : > { %956 = vst [vmem:[%s1680_s30 + $0x20] sm:$0xff] %v940_v61  ;;  %v947_v13 = vadd.f32 %v1461_v28, %v927_v7 }
 0x166   : > { %957 = vst [vmem:[%s1680_s30 + $0x28] sm:$0xff] %v941_v63 }
 0x167   : > { %958 = vst [vmem:[%s1680_s30 + $0x30] sm:$0xff] %v942_v1 }
 0x168   : > { %959 = vst [vmem:[%s1680_s30 + $0x38] sm:$0xff] %v943_v3 }
 0x169   : > { %960 = vst [vmem:[%s1680_s30 + $0x40] sm:$0xff] %v944_v6 }
 0x16a   : > { %961 = vst [vmem:[%s1680_s30 + $0x48] sm:$0xff] %v945_v8 }
 0x16b   : > { %962 = vst [vmem:[%s1680_s30 + $0x50] sm:$0xff] %v946_v10 }
 0x16c   : > { %963 = vst [vmem:[%s1680_s30 + $0x58] sm:$0xff] %v947_v13 }
 0x16d   : > { %964 = vst [vmem:[%s1680_s30 + $0x60] sm:$0xff] %v948_v15 }
 0x16e   : > { %965 = vst [vmem:[%s1680_s30 + $0x68] sm:$0xff] %v949_v17 }
 0x16f   : > { %966 = vst [vmem:[%s1680_s30 + $0x70] sm:$0xff] %v950_v18 }
 0x170   : > { %967 = vst [vmem:[%s1680_s30 + $0x78] sm:$0xff] %v951_v19 }
 0x171 PF: > { %s13_s18 = sadd.s32 1, %s1516_s18   ;;  %s1854_s12 = smov %s1496_s13 }
 0x172   : > { %p10_p0 = scmp.ge.s32.totalorder %s13_s18, 14   ;;  %s1855_s13 = smov %s1590_s25 }
 0x173   : > { %s1856_s14 = smov %s1508_s16  ;;  %s1857_s15 = smov %s1512_s17 }
 0x174   : > { %s1858_s16 = smov %s1861_s19  ;;  %s1859_s17 = smov %s1865_s20 }
 0x175   :  { %12 = sbr.rel (!%p10_p0) target bundleno = 4 (0x4), region = 113 }

// kernel: minildb_forward.6
= control target key start
LH: loop header
LB: loop body
LE: loop exit
PB: predicated region body
PF: predicated region fallthrough
CT: control target
= control target key end

     0   :  { %s1832_s12 = smov 0   ;;  %s1834_s13 = smov 0   ;;  %s2149_s0 = inlined_call_operand.vmem [shape: bf16[512,640], index: 0, kind: input, shape index: {}]   ;;  %s2150_s1 = inlined_call_operand.vmem [shape: bf16[640,128], index: 1, kind: input, shape index: {}]   ;;  %s2151_s2 = inlined_call_operand.vmem [shape: f32[1,128], index: 2, kind: input, shape index: {}]   ;;  %s2152_s3 = inlined_call_operand.vmem [shape: f32[512,128], index: 3, kind: output, shape index: {}]  }
   0x1   :  { %s1836_s14 = smov 0  }
   0x2 LB: > { %s32_s15 = sadd.s32 1, %s1806_s13  ;;  %p1331_p0 = scmp.ge.s32.totalorder %s1810_s14, 1  ;;  %s1810_s14 = sphi %s1836_s14, %s13_s14   ;;  %s1806_s13 = sphi %s1834_s13, %s2154_s13   ;;  %s1802_s12 = sphi %s1832_s12, %s2153_s12  }
   0x3   : > { %p34_p1 = scmp.ge.s32.totalorder %s32_s15, 4  ;;  %p191_p2 = scmp.lt.s32.totalorder %s1810_s14, 5 }
   0x5   : > { %s2156_s15 = smov (%p34_p1, %s32_s15), 0  ;;  %p192_p3 = pnand %p1331_p0, %p191_p2 }
   0x6   : > { %s1332_s22 = sshll.u32 (!%p192_p3), %s1802_s12, 4 }
   0x7   : > { %195 = sbr.rel (%p192_p3) target bundleno = 337 (0x151), region = 32  ;;  %p236_p4 = scmp.lt.s32.totalorder (!%p192_p3), %s1332_s22, 63 }
   0xc   : > { %v1705_v0 = vld [vmem:[%s2150_s1 + $0x38] sm:$0xff]  ;;  %v1704_v1 = vld [vmem:[%s2150_s1 + $0x30] sm:$0xff]  ;;  %v1703_v2 = vld [vmem:[%s2150_s1 + $0x28] sm:$0xff]  ;;  %s2158_s22 = smov (!%p236_p4, %s1332_s22), 63 }
   0xd   : > { %1738 = vmatpush.bf16.msra.mxu1 %v1705_v0  ;;  %1739 = vmatpush.bf16.msra.mxu2 %v1705_v0  ;;  %v1702_v3 = vld [vmem:[%s2150_s1 + $0x20] sm:$0xff]  ;;  %v1701_v4 = vld [vmem:[%s2150_s1 + $0x18] sm:$0xff]  ;;  %v1700_v5 = vld [vmem:[%s2150_s1 + $0x10] sm:$0xff]  ;;  %s1762_s29 = smul.u32 20, %s2158_s22 }
   0xe   : > { %1740 = vmatpush.bf16.msra.mxu3 %v1705_v0  ;;  %879 = vmatpush.bf16.msra.mxu0 %v1705_v0  ;;  %v1699_v6 = vld [vmem:[%s2150_s1 + $0x8] sm:$0xff]  ;;  %v1698_v7 = vld [vmem:[%s2150_s1] sm:$0xff]  ;;  %v1721_v16 = vld [vmem:[%s2150_s1 + $0xb8] sm:$0xff] }
   0xf   : > { %s1880_s7 = scalar_lea.vmem %s2149_s0, %s1762_s29  ;;  %v1713_v17 = vld [vmem:[%s2150_s1 + $0x78] sm:$0xff]  ;;  %v1720_v24 = vld [vmem:[%s2150_s1 + $0xb0] sm:$0xff]  ;;  %v1719_v28 = vld [vmem:[%s2150_s1 + $0xa8] sm:$0xff] }
  0x10   : > { %v1378_v8 = vld [vmem:[%s1880_s7 + $0x50] sm:$0xf]  ;;  %v1670_v9 = vld [vmem:[%s1880_s7 + $0x60] sm:$0xf0]  ;;  %v1418_v10 = vld [vmem:[%s1880_s7 + $0xa0] sm:$0xf] }
  0x11   : > { %1741 = vmatpush.bf16.msra.mxu1 %v1704_v1  ;;  %1742 = vmatpush.bf16.msra.mxu2 %v1704_v1  ;;  %v1680_v11 = vld [vmem:[%s1880_s7 + $0xb0] sm:$0xf0]  ;;  %v1458_v12 = vld [vmem:[%s1880_s7 + $0xf0] sm:$0xf]  ;;  %v1690_v13 = vld [vmem:[%s1880_s7 + $0x100] sm:$0xf0]  ;;  %v1379_v18 = vor.u32 %v1670_v9, %v1378_v8 }
  0x12   : > { %1743 = vmatpush.bf16.msra.mxu3 %v1704_v1  ;;  %880 = vmatpush.bf16.msra.mxu0 %v1704_v1  ;;  %v1338_v14 = vld [vmem:[%s1880_s7] sm:$0xf]  ;;  %v1660_v15 = vld [vmem:[%s1880_s7 + $0x10] sm:$0xf0]  ;;  %v1419_v19 = vor.u32 %v1680_v11, %v1418_v10  ;;  %v1459_v20 = vor.u32 %v1690_v13, %v1458_v12  ;;  %v1729_v22 = vld [vmem:[%s2150_s1 + $0xf8] sm:$0xff] }
  0x13   : > { %v1339_v21 = vor.u32 %v1660_v15, %v1338_v14  ;;  %v1737_v23 = vld [vmem:[%s2150_s1 + $0x138] sm:$0xff]  ;;  %v1712_v25 = vld [vmem:[%s2150_s1 + $0x70] sm:$0xff]  ;;  %v1711_v29 = vld [vmem:[%s2150_s1 + $0x68] sm:$0xff] }
  0x14   : > { %v1728_v26 = vld [vmem:[%s2150_s1 + $0xf0] sm:$0xff]  ;;  %v1727_v30 = vld [vmem:[%s2150_s1 + $0xe8] sm:$0xff]  ;;  %v1718_v32 = vld [vmem:[%s2150_s1 + $0xa0] sm:$0xff] }
  0x15   : > { %1744 = vmatpush.bf16.msra.mxu1 %v1703_v2  ;;  %1745 = vmatpush.bf16.msra.mxu2 %v1703_v2  ;;  %v1736_v27 = vld [vmem:[%s2150_s1 + $0x130] sm:$0xff]  ;;  %v1735_v31 = vld [vmem:[%s2150_s1 + $0x128] sm:$0xff]  ;;  %v1710_v33 = vld [vmem:[%s2150_s1 + $0x60] sm:$0xff] }
  0x16   : > { %1746 = vmatpush.bf16.msra.mxu3 %v1703_v2  ;;  %881 = vmatpush.bf16.msra.mxu0 %v1703_v2  ;;  %v1726_v34 = vld [vmem:[%s2150_s1 + $0xe0] sm:$0xff]  ;;  %v1398_v36 = vld [vmem:[%s1880_s7 + $0x78] sm:$0xf]  ;;  %v1675_v37 = vld [vmem:[%s1880_s7 + $0x88] sm:$0xf0] }
  0x17   : > { %v1734_v35 = vld [vmem:[%s2150_s1 + $0x120] sm:$0xff]  ;;  %v1438_v38 = vld [vmem:[%s1880_s7 + $0xc8] sm:$0xf]  ;;  %v1685_v39 = vld [vmem:[%s1880_s7 + $0xd8] sm:$0xf0]  ;;  %v1399_v46 = vor.u32 %v1675_v37, %v1398_v36 }
  0x18   : > { %v1478_v40 = vld [vmem:[%s1880_s7 + $0x118] sm:$0xf]  ;;  %v1695_v41 = vld [vmem:[%s1880_s7 + $0x128] sm:$0xf0]  ;;  %v1358_v42 = vld [vmem:[%s1880_s7 + $0x28] sm:$0xf]  ;;  %v1439_v47 = vor.u32 %v1685_v39, %v1438_v38 }
  0x19   : > { %1747 = vmatpush.bf16.msra.mxu1 %v1702_v3  ;;  %1748 = vmatpush.bf16.msra.mxu2 %v1702_v3  ;;  %v1665_v43 = vld [vmem:[%s1880_s7 + $0x38] sm:$0xf0]  ;;  %v1479_v48 = vor.u32 %v1695_v41, %v1478_v40  ;;  %v1716_v52 = vld [vmem:[%s2150_s1 + $0x90] sm:$0xff]  ;;  %v1715_v56 = vld [vmem:[%s2150_s1 + $0x88] sm:$0xff] }
  0x1a   : > { %1749 = vmatpush.bf16.msra.mxu3 %v1702_v3  ;;  %882 = vmatpush.bf16.msra.mxu0 %v1702_v3  ;;  %v1717_v44 = vld [vmem:[%s2150_s1 + $0x98] sm:$0xff]  ;;  %v1359_v49 = vor.u32 %v1665_v43, %v1358_v42  ;;  %v1708_v53 = vld [vmem:[%s2150_s1 + $0x50] sm:$0xff]  ;;  %v1707_v57 = vld [vmem:[%s2150_s1 + $0x48] sm:$0xff] }
  0x1b   : > { %v1709_v45 = vld [vmem:[%s2150_s1 + $0x58] sm:$0xff]  ;;  %v1724_v54 = vld [vmem:[%s2150_s1 + $0xd0] sm:$0xff]  ;;  %v1723_v58 = vld [vmem:[%s2150_s1 + $0xc8] sm:$0xff] }
  0x1c   : > { %v1725_v50 = vld [vmem:[%s2150_s1 + $0xd8] sm:$0xff]  ;;  %v1732_v55 = vld [vmem:[%s2150_s1 + $0x110] sm:$0xff]  ;;  %v1731_v59 = vld [vmem:[%s2150_s1 + $0x108] sm:$0xff] }
  0x1d   : > { %1750 = vmatpush.bf16.msra.mxu1 %v1701_v4  ;;  %1751 = vmatpush.bf16.msra.mxu2 %v1701_v4  ;;  %v1733_v51 = vld [vmem:[%s2150_s1 + $0x118] sm:$0xff]  ;;  %v1714_v60 = vld [vmem:[%s2150_s1 + $0x80] sm:$0xff]  ;;  %v1346_v2 = vld [vmem:[%s1880_s7 + $0x8] sm:$0xf] }
  0x1e   : > { %1752 = vmatpush.bf16.msra.mxu3 %v1701_v4  ;;  %883 = vmatpush.bf16.msra.mxu0 %v1701_v4  ;;  %v1706_v61 = vld [vmem:[%s2150_s1 + $0x40] sm:$0xff]  ;;  %v1340_v1 = vld [vmem:[%s1880_s7 + $0x14] sm:$0xf0]  ;;  %v1661_v3 = vld [vmem:[%s1880_s7 + $0x18] sm:$0xf0] }
  0x1f   : > { %v1722_v62 = vld [vmem:[%s2150_s1 + $0xc0] sm:$0xff]  ;;  %v1659_v4 = vld [vmem:[%s1880_s7 + $0xc] sm:$0xf]  ;;  %v1347_v9 = vor.u32 %v1661_v3, %v1346_v2  ;;  %v1366_v14 = vld [vmem:[%s1880_s7 + $0x30] sm:$0xf] }
  0x20   : > { %v1730_v63 = vld [vmem:[%s2150_s1 + $0x100] sm:$0xff]  ;;  %v1663_v12 = vld [vmem:[%s1880_s7 + $0x2c] sm:$0xf]  ;;  %v1673_v36 = vld [vmem:[%s1880_s7 + $0x7c] sm:$0xf] }
  0x21   : > { %1753 = vmatpush.bf16.msra.mxu1 %v1700_v5  ;;  %1754 = vmatpush.bf16.msra.mxu2 %v1700_v5  ;;  %v1658_v0 = vld [vmem:[%s1880_s7 + $0x4] sm:$0xf]  ;;  %v1360_v13 = vld [vmem:[%s1880_s7 + $0x3c] sm:$0xf0]  ;;  %v1400_v37 = vld [vmem:[%s1880_s7 + $0x8c] sm:$0xf0] }
  0x22   : > { %1755 = vmatpush.bf16.msra.mxu3 %v1700_v5  ;;  %884 = vmatpush.bf16.msra.mxu0 %v1700_v5  ;;  %v1348_v5 = vld [vmem:[%s1880_s7 + $0x1c] sm:$0xf0]  ;;  %v1343_v8 = vor.u32 %v1658_v0, %v1340_v1  ;;  %v1666_v15 = vld [vmem:[%s1880_s7 + $0x40] sm:$0xf0]  ;;  %v1676_v39 = vld [vmem:[%s1880_s7 + $0x90] sm:$0xf0] }
  0x23   : > { %v1351_v10 = vor.u32 %v1659_v4, %v1348_v5  ;;  %v1406_v38 = vld [vmem:[%s1880_s7 + $0x80] sm:$0xf]  ;;  %v1674_v40 = vld [vmem:[%s1880_s7 + $0x84] sm:$0xf]  ;;  %v1408_v41 = vld [vmem:[%s1880_s7 + $0x94] sm:$0xf0] }
  0x24   : > { %v1414_v42 = vld [vmem:[%s1880_s7 + $0x88] sm:$0xf]  ;;  %v1677_v43 = vld [vmem:[%s1880_s7 + $0x98] sm:$0xf0]  ;;  %v1684_v0 = vld [vmem:[%s1880_s7 + $0xd4] sm:$0xf] }
  0x25   : > { %1756 = vmatpush.bf16.msra.mxu1 %v1699_v6  ;;  %1757 = vmatpush.bf16.msra.mxu2 %v1699_v6  ;;  %v1448_v1 = vld [vmem:[%s1880_s7 + $0xe4] sm:$0xf0]  ;;  %v1454_v2 = vld [vmem:[%s1880_s7 + $0xd8] sm:$0xf]  ;;  %v1687_v3 = vld [vmem:[%s1880_s7 + $0xe8] sm:$0xf0] }
  0x26   : > { %1758 = vmatpush.bf16.msra.mxu3 %v1699_v6  ;;  %885 = vmatpush.bf16.msra.mxu0 %v1699_v6  ;;  %v1354_v6 = vld [vmem:[%s1880_s7 + $0x10] sm:$0xf] }
  0x29   : > { %1759 = vmatpush.bf16.msra.mxu1 %v1698_v7  ;;  %1760 = vmatpush.bf16.msra.mxu2 %v1698_v7 }
  0x2a   : > { %1761 = vmatpush.bf16.msra.mxu3 %v1698_v7  ;;  %886 = vmatpush.bf16.msra.mxu0 %v1698_v7  ;;  %v1662_v7 = vld [vmem:[%s1880_s7 + $0x20] sm:$0xf0] }
  0x2b   : > { %v1355_v11 = vor.u32 %v1662_v7, %v1354_v6  ;;  %v1451_v6 = vor.u32 %v1684_v0, %v1448_v1  ;;  %v1455_v7 = vor.u32 %v1687_v3, %v1454_v2 }
  0x2c   : > { %897 = vmatmul.bf16.vlgmr.msra.gmra.mxu1 %v1379_v18  ;;  %907 = vmatmul.bf16.vlgmr.msra.gmra.mxu2 %v1419_v19  ;;  %v1374_v18 = vld [vmem:[%s1880_s7 + $0x38] sm:$0xf]  ;;  %v1667_v19 = vld [vmem:[%s1880_s7 + $0x48] sm:$0xf0] }
  0x2d   : > { %977 = vmatpush.bf16.msrb.mxu2 %v1721_v16  ;;  %928 = vmatpush.bf16.msrb.mxu1 %v1713_v17  ;;  %v1664_v16 = vld [vmem:[%s1880_s7 + $0x34] sm:$0xf]  ;;  %v1368_v17 = vld [vmem:[%s1880_s7 + $0x44] sm:$0xf0] }
  0x2e   : > { %917 = vmatmul.bf16.vlgmr.msra.gmra.mxu3 %v1459_v20  ;;  %887 = vmatmul.bf16.vlgmr.msra.gmra.mxu0 %v1339_v21  ;;  %v1363_v20 = vor.u32 %v1663_v12, %v1360_v13  ;;  %v1367_v21 = vor.u32 %v1666_v15, %v1366_v14  ;;  %v1689_v12 = vld [vmem:[%s1880_s7 + $0xfc] sm:$0xf]  ;;  %v1468_v13 = vld [vmem:[%s1880_s7 + $0x10c] sm:$0xf0]  ;;  %v1474_v14 = vld [vmem:[%s1880_s7 + $0x100] sm:$0xf] }
  0x2f   : > { %1026 = vmatpush.bf16.msrb.mxu3 %v1729_v22  ;;  %1075 = vmatpush.bf16.msrb.mxu0 %v1737_v23  ;;  %v1371_v22 = vor.u32 %v1664_v16, %v1368_v17  ;;  %v1375_v23 = vor.u32 %v1667_v19, %v1374_v18  ;;  %v1692_v15 = vld [vmem:[%s1880_s7 + $0x110] sm:$0xf0]  ;;  %v1471_v19 = vor.u32 %v1689_v12, %v1468_v13 }
  0x31   : > { %978 = vmatpush.bf16.msrb.mxu2 %v1720_v24  ;;  %929 = vmatpush.bf16.msrb.mxu1 %v1712_v25  ;;  %v1668_v24 = vld [vmem:[%s1880_s7 + $0x54] sm:$0xf]  ;;  %v1380_v25 = vld [vmem:[%s1880_s7 + $0x64] sm:$0xf0] }
  0x33   : > { %1027 = vmatpush.bf16.msrb.mxu3 %v1728_v26  ;;  %1076 = vmatpush.bf16.msrb.mxu0 %v1736_v27  ;;  %v1386_v26 = vld [vmem:[%s1880_s7 + $0x58] sm:$0xf]  ;;  %v1671_v27 = vld [vmem:[%s1880_s7 + $0x68] sm:$0xf0] }
  0x35   : > { %979 = vmatpush.bf16.msrb.mxu2 %v1719_v28  ;;  %930 = vmatpush.bf16.msrb.mxu1 %v1711_v29  ;;  %v1669_v28 = vld [vmem:[%s1880_s7 + $0x5c] sm:$0xf]  ;;  %v1388_v29 = vld [vmem:[%s1880_s7 + $0x6c] sm:$0xf0] }
  0x37   : > { %1028 = vmatpush.bf16.msrb.mxu3 %v1727_v30  ;;  %1077 = vmatpush.bf16.msrb.mxu0 %v1735_v31  ;;  %v1394_v30 = vld [vmem:[%s1880_s7 + $0x60] sm:$0xf]  ;;  %v1672_v31 = vld [vmem:[%s1880_s7 + $0x70] sm:$0xf0] }
  0x39   : > { %980 = vmatpush.bf16.msrb.mxu2 %v1718_v32  ;;  %931 = vmatpush.bf16.msrb.mxu1 %v1710_v33  ;;  %v1383_v32 = vor.u32 %v1668_v24, %v1380_v25  ;;  %v1387_v33 = vor.u32 %v1671_v27, %v1386_v26  ;;  %v1693_v26 = vld [vmem:[%s1880_s7 + $0x11c] sm:$0xf]  ;;  %v1480_v27 = vld [vmem:[%s1880_s7 + $0x12c] sm:$0xf0] }
  0x3b   : > { %1029 = vmatpush.bf16.msrb.mxu3 %v1726_v34  ;;  %1078 = vmatpush.bf16.msrb.mxu0 %v1734_v35  ;;  %v1391_v34 = vor.u32 %v1669_v28, %v1388_v29  ;;  %v1395_v35 = vor.u32 %v1672_v31, %v1394_v30  ;;  %v1486_v28 = vld [vmem:[%s1880_s7 + $0x120] sm:$0xf]  ;;  %v1696_v29 = vld [vmem:[%s1880_s7 + $0x130] sm:$0xf0]  ;;  %v1694_v30 = vld [vmem:[%s1880_s7 + $0x124] sm:$0xf] }
  0x3c   : > { %902 = vmatmul.bf16.gmra.mxu1 %v1399_v46  ;;  %912 = vmatmul.bf16.gmra.mxu2 %v1439_v47  ;;  %v1411_v46 = vor.u32 %v1674_v40, %v1408_v41  ;;  %v1415_v47 = vor.u32 %v1677_v43, %v1414_v42  ;;  %v1488_v31 = vld [vmem:[%s1880_s7 + $0x134] sm:$0xf0] }
  0x3d   : > { %981 = vmatpush.bf16.msrb.mxu2 %v1717_v44  ;;  %932 = vmatpush.bf16.msrb.mxu1 %v1709_v45  ;;  %v1403_v44 = vor.u32 %v1673_v36, %v1400_v37  ;;  %v1407_v45 = vor.u32 %v1676_v39, %v1406_v38  ;;  %v1483_v36 = vor.u32 %v1693_v26, %v1480_v27 }
  0x3e   : > { %922 = vmatmul.bf16.gmra.mxu3 %v1479_v48  ;;  %892 = vmatmul.bf16.gmra.mxu0 %v1359_v49  ;;  %v1678_v48 = vld [vmem:[%s1880_s7 + $0xa4] sm:$0xf]  ;;  %v1420_v49 = vld [vmem:[%s1880_s7 + $0xb4] sm:$0xf0]  ;;  %v1487_v37 = vor.u32 %v1696_v29, %v1486_v28  ;;  %v1491_v39 = vor.u32 %v1694_v30, %v1488_v31 }
  0x3f   : > { %1030 = vmatpush.bf16.msrb.mxu3 %v1725_v50  ;;  %1079 = vmatpush.bf16.msrb.mxu0 %v1733_v51  ;;  %v1426_v50 = vld [vmem:[%s1880_s7 + $0xa8] sm:$0xf]  ;;  %v1681_v51 = vld [vmem:[%s1880_s7 + $0xb8] sm:$0xf0] }
  0x41   : > { %982 = vmatpush.bf16.msrb.mxu2 %v1716_v52  ;;  %933 = vmatpush.bf16.msrb.mxu1 %v1708_v53  ;;  %v1679_v52 = vld [vmem:[%s1880_s7 + $0xac] sm:$0xf]  ;;  %v1428_v53 = vld [vmem:[%s1880_s7 + $0xbc] sm:$0xf0] }
  0x43   : > { %1031 = vmatpush.bf16.msrb.mxu3 %v1724_v54  ;;  %1080 = vmatpush.bf16.msrb.mxu0 %v1732_v55  ;;  %v1434_v54 = vld [vmem:[%s1880_s7 + $0xb0] sm:$0xf]  ;;  %v1682_v55 = vld [vmem:[%s1880_s7 + $0xc0] sm:$0xf0] }
  0x45   : > { %983 = vmatpush.bf16.msrb.mxu2 %v1715_v56  ;;  %934 = vmatpush.bf16.msrb.mxu1 %v1707_v57  ;;  %v1423_v56 = vor.u32 %v1678_v48, %v1420_v49  ;;  %v1427_v57 = vor.u32 %v1681_v51, %v1426_v50 }
  0x47   : > { %1032 = vmatpush.bf16.msrb.mxu3 %v1723_v58  ;;  %1081 = vmatpush.bf16.msrb.mxu0 %v1731_v59  ;;  %v1431_v58 = vor.u32 %v1679_v52, %v1428_v53  ;;  %v1435_v59 = vor.u32 %v1682_v55, %v1434_v54 }
  0x49   : > { %984 = vmatpush.bf16.msrb.mxu2 %v1714_v60  ;;  %935 = vmatpush.bf16.msrb.mxu1 %v1706_v61  ;;  %v1683_v60 = vld [vmem:[%s1880_s7 + $0xcc] sm:$0xf]  ;;  %v1440_v61 = vld [vmem:[%s1880_s7 + $0xdc] sm:$0xf0] }
  0x4a   : > { %v1443_v4 = vor.u32 %v1683_v60, %v1440_v61 }
  0x4b   : > { %1033 = vmatpush.bf16.msrb.mxu3 %v1722_v62  ;;  %1082 = vmatpush.bf16.msrb.mxu0 %v1730_v63  ;;  %v1446_v62 = vld [vmem:[%s1880_s7 + $0xd0] sm:$0xf]  ;;  %v1686_v63 = vld [vmem:[%s1880_s7 + $0xe0] sm:$0xf0] }
  0x4c   : > { %936 = vmatmul.bf16.vlgmr.msrb.gmra.mxu1 %v1343_v8  ;;  %985 = vmatmul.bf16.vlgmr.msrb.gmra.mxu2 %v1347_v9  ;;  %v1447_v5 = vor.u32 %v1686_v63, %v1446_v62  ;;  %v1688_v8 = vld [vmem:[%s1880_s7 + $0xf4] sm:$0xf]  ;;  %v1460_v9 = vld [vmem:[%s1880_s7 + $0x104] sm:$0xf0] }
  0x4d   : > { %v1463_v16 = vor.u32 %v1688_v8, %v1460_v9 }
  0x4e   : > { %1034 = vmatmul.bf16.vlgmr.msrb.gmra.mxu3 %v1351_v10  ;;  %1083 = vmatmul.bf16.vlgmr.msrb.gmra.mxu0 %v1355_v11  ;;  %v1466_v10 = vld [vmem:[%s1880_s7 + $0xf8] sm:$0xf]  ;;  %v1691_v11 = vld [vmem:[%s1880_s7 + $0x108] sm:$0xf0] }
  0x4f   : > { %v1467_v17 = vor.u32 %v1691_v11, %v1466_v10 }
  0x5c   : > { %941 = vmatmul.bf16.gmra.mxu1 %v1363_v20  ;;  %990 = vmatmul.bf16.gmra.mxu2 %v1367_v21  ;;  %v1475_v20 = vor.u32 %v1692_v15, %v1474_v14 }
  0x5e   : > { %1039 = vmatmul.bf16.gmra.mxu3 %v1371_v22  ;;  %1088 = vmatmul.bf16.gmra.mxu0 %v1375_v23 }
  0x6c   : > { %946 = vmatmul.bf16.gmra.mxu1 %v1383_v32  ;;  %995 = vmatmul.bf16.gmra.mxu2 %v1387_v33  ;;  %v1494_v32 = vld [vmem:[%s1880_s7 + $0x128] sm:$0xf]  ;;  %v1697_v33 = vld [vmem:[%s1880_s7 + $0x138] sm:$0xf0]  ;;  %s1335_s7 = sshll.u32 %s2158_s22, 3 }
  0x6d   : > { %v1495_v40 = vor.u32 %v1697_v33, %v1494_v32  ;;  %s2094_s12 = scalar_lea.vmem %s2152_s3, %s1335_s7 }
  0x6e   : > { %1044 = vmatmul.bf16.gmra.mxu3 %v1391_v34  ;;  %1093 = vmatmul.bf16.gmra.mxu0 %v1395_v35 }
  0x7c   : > { %951 = vmatmul.bf16.gmra.mxu1 %v1403_v44  ;;  %1000 = vmatmul.bf16.gmra.mxu2 %v1407_v45 }
  0x7e   : > { %1049 = vmatmul.bf16.gmra.mxu3 %v1411_v46  ;;  %1098 = vmatmul.bf16.gmra.mxu0 %v1415_v47 }
  0x8c   : > { %956 = vmatmul.bf16.gmra.mxu1 %v1423_v56  ;;  %1005 = vmatmul.bf16.gmra.mxu2 %v1427_v57  ;;  %v2089_v56 = vld [vmem:[%s2151_s2] ss:$0 sm:$0xff] }
  0x8e   : > { %1054 = vmatmul.bf16.gmra.mxu3 %v1431_v58  ;;  %1103 = vmatmul.bf16.gmra.mxu0 %v1435_v59 }
  0x9c   : > { %961 = vmatmul.bf16.gmra.mxu1 %v1443_v4  ;;  %1010 = vmatmul.bf16.gmra.mxu2 %v1447_v5 }
  0x9e   : > { %1059 = vmatmul.bf16.gmra.mxu3 %v1451_v6  ;;  %1108 = vmatmul.bf16.gmra.mxu0 %v1455_v7 }
  0xa9   : > { %v2053_v18 = vpop.f32.mrf.mxu1 }
  0xab   : > { %v888_v21 = vpop.f32.mrf.mxu0 }
  0xac   : > { %966 = vmatmul.bf16.gmra.mxu1 %v1463_v16  ;;  %1015 = vmatmul.bf16.gmra.mxu2 %v1467_v17 }
  0xae   : > { %1064 = vmatmul.bf16.gmra.mxu3 %v1471_v19  ;;  %1113 = vmatmul.bf16.gmra.mxu0 %v1475_v20 }
  0xaf   : > { %v2055_v22 = vpop.f32.mrf.mxu2 }
  0xb1   : > { %v2057_v23 = vpop.f32.mrf.mxu3  ;;  %v2059_v24 = vpop.f32.mrf.mxu1 }
  0xb3   : > { %v890_v25 = vpop.f32.mrf.mxu0 }
  0xb7   : > { %v2069_v34 = vpop.f32.mrf.mxu2 }
  0xb9   : > { %v2071_v35 = vpop.f32.mrf.mxu3  ;;  %v2073_v38 = vpop.f32.mrf.mxu1 }
  0xbb   : > { %v893_v41 = vpop.f32.mrf.mxu0 }
  0xbc   : > { %971 = vmatmul.bf16.gmra.mxu1 %v1483_v36  ;;  %1020 = vmatmul.bf16.gmra.mxu2 %v1487_v37 }
  0xbe   : > { %1069 = vmatmul.bf16.gmra.mxu3 %v1491_v39  ;;  %1118 = vmatmul.bf16.gmra.mxu0 %v1495_v40 }
  0xbf   : > { %v2075_v42 = vpop.f32.mrf.mxu2 }
  0xc1   : > { %v2077_v43 = vpop.f32.mrf.mxu3  ;;  %v2079_v44 = vpop.f32.mrf.mxu1 }
  0xc3   : > { %v895_v45 = vpop.f32.mrf.mxu0 }
  0xc7   : > { %v2081_v46 = vpop.f32.mrf.mxu2 }
  0xc9   : > { %v2083_v47 = vpop.f32.mrf.mxu3  ;;  %v937_v48 = vpop.f32.mrf.mxu1 }
  0xca   : > { %v938_v50 = vadd.f32 %v937_v48, %v888_v21 }
  0xcb   : > { %v1084_v49 = vpop.f32.mrf.mxu0 }
  0xcf   : > { %v986_v51 = vpop.f32.mrf.mxu2 }
  0xd0   : > { %v987_v52 = vadd.f32 %v986_v51, %v938_v50 }
  0xd1   : > { %v1035_v53 = vpop.f32.mrf.mxu3  ;;  %v939_v54 = vpop.f32.mrf.mxu1 }
  0xd2   : > { %v1036_v55 = vadd.f32 %v1035_v53, %v987_v52  ;;  %v940_v60 = vadd.f32 %v939_v54, %v890_v25 }
  0xd3   : > { %v1086_v57 = vpop.f32.mrf.mxu0 }
  0xd4   : > { %v1085_v58 = vadd.f32 %v1084_v49, %v1036_v55 }
  0xd6   : > { %v1179_v59 = vadd.f32 %v2089_v56, %v1085_v58 }
  0xd7   : > { %v988_v61 = vpop.f32.mrf.mxu2 }
  0xd8   : > { %1195 = vst [vmem:[%s2094_s12] sm:$0xff] %v1179_v59  ;;  %v989_v62 = vadd.f32 %v988_v61, %v940_v60 }
  0xd9   : > { %v1037_v63 = vpop.f32.mrf.mxu3  ;;  %v942_v0 = vpop.f32.mrf.mxu1 }
  0xda   : > { %v1038_v1 = vadd.f32 %v1037_v63, %v989_v62  ;;  %v943_v5 = vadd.f32 %v942_v0, %v893_v41 }
  0xdb   : > { %v1089_v2 = vpop.f32.mrf.mxu0 }
  0xdc   : > { %v1087_v3 = vadd.f32 %v1086_v57, %v1038_v1 }
  0xde   : > { %v1180_v4 = vadd.f32 %v2089_v56, %v1087_v3 }
  0xdf   : > { %v991_v6 = vpop.f32.mrf.mxu2 }
  0xe0   : > { %1196 = vst [vmem:[%s2094_s12 + $0x8] sm:$0xff] %v1180_v4  ;;  %v992_v7 = vadd.f32 %v991_v6, %v943_v5 }
  0xe1   : > { %v1040_v8 = vpop.f32.mrf.mxu3  ;;  %v944_v9 = vpop.f32.mrf.mxu1 }
  0xe2   : > { %v1041_v10 = vadd.f32 %v1040_v8, %v992_v7  ;;  %v945_v14 = vadd.f32 %v944_v9, %v895_v45 }
  0xe3   : > { %v1091_v11 = vpop.f32.mrf.mxu0 }
  0xe4   : > { %v1090_v12 = vadd.f32 %v1089_v2, %v1041_v10 }
  0xe6   : > { %v1181_v13 = vadd.f32 %v2089_v56, %v1090_v12 }
  0xe7   : > { %v993_v15 = vpop.f32.mrf.mxu2 }
  0xe8   : > { %1197 = vst [vmem:[%s2094_s12 + $0x10] sm:$0xff] %v1181_v13  ;;  %v994_v16 = vadd.f32 %v993_v15, %v945_v14 }
  0xe9   : > { %v1042_v17 = vpop.f32.mrf.mxu3  ;;  %v947_v19 = vpop.f32.mrf.mxu1 }
  0xea   : > { %v1043_v20 = vadd.f32 %v1042_v17, %v994_v16  ;;  %v948_v27 = vadd.f32 %v947_v19, %v2053_v18 }
  0xeb   : > { %v1094_v21 = vpop.f32.mrf.mxu0 }
  0xec   : > { %v1092_v25 = vadd.f32 %v1091_v11, %v1043_v20 }
  0xee   : > { %v1182_v26 = vadd.f32 %v2089_v56, %v1092_v25 }
  0xef   : > { %v996_v28 = vpop.f32.mrf.mxu2 }
  0xf0   : > { %1198 = vst [vmem:[%s2094_s12 + $0x18] sm:$0xff] %v1182_v26  ;;  %v997_v29 = vadd.f32 %v996_v28, %v948_v27 }
  0xf1   : > { %v1045_v30 = vpop.f32.mrf.mxu3  ;;  %v949_v31 = vpop.f32.mrf.mxu1 }
  0xf2   : > { %v1046_v32 = vadd.f32 %v1045_v30, %v997_v29  ;;  %v950_v39 = vadd.f32 %v949_v31, %v2059_v24 }
  0xf3   : > { %v1096_v33 = vpop.f32.mrf.mxu0 }
  0xf4   : > { %v1095_v36 = vadd.f32 %v1094_v21, %v1046_v32 }
  0xf6   : > { %v1183_v37 = vadd.f32 %v2089_v56, %v1095_v36 }
  0xf7   : > { %v998_v40 = vpop.f32.mrf.mxu2 }
  0xf8   : > { %1199 = vst [vmem:[%s2094_s12 + $0x20] sm:$0xff] %v1183_v37  ;;  %v999_v41 = vadd.f32 %v998_v40, %v950_v39 }
  0xf9   : > { %v1047_v45 = vpop.f32.mrf.mxu3  ;;  %v952_v48 = vpop.f32.mrf.mxu1 }
  0xfa   : > { %v1048_v49 = vadd.f32 %v1047_v45, %v999_v41  ;;  %v953_v52 = vadd.f32 %v952_v48, %v2073_v38 }
  0xfb   : > { %v1099_v18 = vpop.f32.mrf.mxu0 }
  0xfc   : > { %v1097_v50 = vadd.f32 %v1096_v33, %v1048_v49 }
  0xfe   : > { %v1184_v51 = vadd.f32 %v2089_v56, %v1097_v50 }
  0xff   : > { %v1001_v53 = vpop.f32.mrf.mxu2 }
 0x100   : > { %1200 = vst [vmem:[%s2094_s12 + $0x28] sm:$0xff] %v1184_v51  ;;  %v1002_v54 = vadd.f32 %v1001_v53, %v953_v52 }
 0x101   : > { %v1050_v55 = vpop.f32.mrf.mxu3  ;;  %v954_v57 = vpop.f32.mrf.mxu1 }
 0x102   : > { %v1051_v58 = vadd.f32 %v1050_v55, %v1002_v54  ;;  %v955_v61 = vadd.f32 %v954_v57, %v2079_v44 }
 0x103   : > { %v1101_v24 = vpop.f32.mrf.mxu0 }
 0x104   : > { %v1100_v59 = vadd.f32 %v1099_v18, %v1051_v58 }
 0x106   : > { %v1185_v60 = vadd.f32 %v2089_v56, %v1100_v59 }
 0x107   : > { %v1003_v62 = vpop.f32.mrf.mxu2 }
 0x108   : > { %1201 = vst [vmem:[%s2094_s12 + $0x30] sm:$0xff] %v1185_v60  ;;  %v1004_v63 = vadd.f32 %v1003_v62, %v955_v61 }
 0x109   : > { %v1052_v0 = vpop.f32.mrf.mxu3  ;;  %v957_v1 = vpop.f32.mrf.mxu1 }
 0x10a   : > { %v1053_v2 = vadd.f32 %v1052_v0, %v1004_v63  ;;  %v958_v5 = vadd.f32 %v957_v1, %v2055_v22 }
 0x10b   : > { %v1104_v38 = vpop.f32.mrf.mxu0 }
 0x10c   : > { %v1102_v3 = vadd.f32 %v1101_v24, %v1053_v2 }
 0x10e   : > { %v1186_v4 = vadd.f32 %v2089_v56, %v1102_v3 }
 0x10f   : > { %v1006_v6 = vpop.f32.mrf.mxu2 }
 0x110   : > { %1202 = vst [vmem:[%s2094_s12 + $0x38] sm:$0xff] %v1186_v4  ;;  %v1007_v7 = vadd.f32 %v1006_v6, %v958_v5 }
 0x111   : > { %v1055_v8 = vpop.f32.mrf.mxu3  ;;  %v959_v9 = vpop.f32.mrf.mxu1 }
 0x112   : > { %v1056_v10 = vadd.f32 %v1055_v8, %v1007_v7  ;;  %v960_v13 = vadd.f32 %v959_v9, %v2069_v34 }
 0x113   : > { %v1106_v44 = vpop.f32.mrf.mxu0 }
 0x114   : > { %v1105_v11 = vadd.f32 %v1104_v38, %v1056_v10 }
 0x116   : > { %v1187_v12 = vadd.f32 %v2089_v56, %v1105_v11 }
 0x117   : > { %v1008_v14 = vpop.f32.mrf.mxu2 }
 0x118   : > { %1203 = vst [vmem:[%s2094_s12 + $0x40] sm:$0xff] %v1187_v12  ;;  %v1009_v15 = vadd.f32 %v1008_v14, %v960_v13 }
 0x119   : > { %v1057_v16 = vpop.f32.mrf.mxu3  ;;  %v962_v17 = vpop.f32.mrf.mxu1 }
 0x11a   : > { %v1058_v19 = vadd.f32 %v1057_v16, %v1009_v15  ;;  %v963_v25 = vadd.f32 %v962_v17, %v2075_v42 }
 0x11b   : > { %v1109_v22 = vpop.f32.mrf.mxu0 }
 0x11c   : > { %v1107_v20 = vadd.f32 %v1106_v44, %v1058_v19 }
 0x11e   : > { %v1188_v21 = vadd.f32 %v2089_v56, %v1107_v20 }
 0x11f   : > { %v1011_v26 = vpop.f32.mrf.mxu2 }
 0x120   : > { %1204 = vst [vmem:[%s2094_s12 + $0x48] sm:$0xff] %v1188_v21  ;;  %v1012_v27 = vadd.f32 %v1011_v26, %v963_v25 }
 0x121   : > { %v1060_v28 = vpop.f32.mrf.mxu3  ;;  %v964_v29 = vpop.f32.mrf.mxu1 }
 0x122   : > { %v1061_v30 = vadd.f32 %v1060_v28, %v1012_v27  ;;  %v965_v33 = vadd.f32 %v964_v29, %v2081_v46 }
 0x123   : > { %v1111_v34 = vpop.f32.mrf.mxu0 }
 0x124   : > { %v1110_v31 = vadd.f32 %v1109_v22, %v1061_v30 }
 0x126   : > { %v1189_v32 = vadd.f32 %v2089_v56, %v1110_v31 }
 0x127   : > { %v1013_v36 = vpop.f32.mrf.mxu2 }
 0x128   : > { %1205 = vst [vmem:[%s2094_s12 + $0x50] sm:$0xff] %v1189_v32  ;;  %v1014_v37 = vadd.f32 %v1013_v36, %v965_v33 }
 0x129   : > { %v1062_v39 = vpop.f32.mrf.mxu3  ;;  %v967_v40 = vpop.f32.mrf.mxu1 }
 0x12a   : > { %v1063_v41 = vadd.f32 %v1062_v39, %v1014_v37  ;;  %v968_v49 = vadd.f32 %v967_v40, %v2057_v23 }
 0x12b   : > { %v1114_v45 = vpop.f32.mrf.mxu0 }
 0x12c   : > { %v1112_v42 = vadd.f32 %v1111_v34, %v1063_v41 }
 0x12e   : > { %v1190_v48 = vadd.f32 %v2089_v56, %v1112_v42 }
 0x12f   : > { %v1016_v18 = vpop.f32.mrf.mxu2 }
 0x130   : > { %1206 = vst [vmem:[%s2094_s12 + $0x58] sm:$0xff] %v1190_v48  ;;  %v1017_v50 = vadd.f32 %v1016_v18, %v968_v49 }
 0x131   : > { %v1065_v51 = vpop.f32.mrf.mxu3  ;;  %v969_v52 = vpop.f32.mrf.mxu1 }
 0x132   : > { %v1066_v46 = vadd.f32 %v1065_v51, %v1017_v50  ;;  %v970_v55 = vadd.f32 %v969_v52, %v2071_v35 }
 0x133   : > { %v1116_v57 = vpop.f32.mrf.mxu0 }
 0x134   : > { %v1115_v53 = vadd.f32 %v1114_v45, %v1066_v46 }
 0x136   : > { %v1191_v54 = vadd.f32 %v2089_v56, %v1115_v53 }
 0x137   : > { %v1018_v58 = vpop.f32.mrf.mxu2 }
 0x138   : > { %1207 = vst [vmem:[%s2094_s12 + $0x60] sm:$0xff] %v1191_v54  ;;  %v1019_v24 = vadd.f32 %v1018_v58, %v970_v55 }
 0x139   : > { %v1067_v59 = vpop.f32.mrf.mxu3  ;;  %v972_v60 = vpop.f32.mrf.mxu1 }
 0x13a   : > { %v1068_v23 = vadd.f32 %v1067_v59, %v1019_v24  ;;  %v973_v63 = vadd.f32 %v972_v60, %v2077_v43 }
 0x13b   : > { %v1119_v38 = vpop.f32.mrf.mxu0 }
 0x13c   : > { %v1117_v61 = vadd.f32 %v1116_v57, %v1068_v23 }
 0x13e   : > { %v1192_v62 = vadd.f32 %v2089_v56, %v1117_v61 }
 0x13f   : > { %v1021_v0 = vpop.f32.mrf.mxu2 }
 0x140   : > { %1208 = vst [vmem:[%s2094_s12 + $0x68] sm:$0xff] %v1192_v62  ;;  %v1022_v1 = vadd.f32 %v1021_v0, %v973_v63 }
 0x141   : > { %v1070_v2 = vpop.f32.mrf.mxu3  ;;  %v974_v3 = vpop.f32.mrf.mxu1 }
 0x142   : > { %v1071_v35 = vadd.f32 %v1070_v2, %v1022_v1  ;;  %v975_v6 = vadd.f32 %v974_v3, %v2083_v47 }
 0x143   : > { %v1121_v44 = vpop.f32.mrf.mxu0 }
 0x144   : > { %v1120_v4 = vadd.f32 %v1119_v38, %v1071_v35 }
 0x146   : > { %v1193_v5 = vadd.f32 %v2089_v56, %v1120_v4 }
 0x147   : > { %v1023_v7 = vpop.f32.mrf.mxu2 }
 0x148   : > { %1209 = vst [vmem:[%s2094_s12 + $0x70] sm:$0xff] %v1193_v5  ;;  %v1024_v8 = vadd.f32 %v1023_v7, %v975_v6 }
 0x149   : > { %v1072_v9 = vpop.f32.mrf.mxu3 }
 0x14a   : > { %v1073_v10 = vadd.f32 %v1072_v9, %v1024_v8 }
 0x14c   : > { %v1122_v43 = vadd.f32 %v1121_v44, %v1073_v10 }
 0x14e   : > { %v1194_v11 = vadd.f32 %v2089_v56, %v1122_v43 }
 0x150   : > { %1210 = vst [vmem:[%s2094_s12 + $0x78] sm:$0xff] %v1194_v11 }
 0x151 PF: > { %s13_s14 = sadd.s32 1, %s1810_s14   ;;  %s2153_s12 = smov %s1806_s13 }
 0x152   : > { %p10_p5 = scmp.ge.s32.totalorder %s13_s14, 6   ;;  %s2154_s13 = smov %s2156_s15 }
 0x154   :  { %12 = sbr.rel (!%p10_p5) target bundleno = 2 (0x2), region = 76 }

// kernel: minildb_forward.7
= control target key start
LH: loop header
LB: loop body
LE: loop exit
PB: predicated region body
PF: predicated region fallthrough
CT: control target
= control target key end

     0   :  { %s904_s12 = smov 0   ;;  %s906_s13 = smov 0   ;;  %s1007_s0 = inlined_call_operand.vmem [shape: bf16[512,128], index: 0, kind: input, shape index: {}]   ;;  %s1008_s1 = inlined_call_operand.vmem [shape: bf16[128,128], index: 1, kind: input, shape index: {}]   ;;  %s1009_s2 = inlined_call_operand.vmem [shape: f32[1,128], index: 2, kind: input, shape index: {}]   ;;  %s1010_s3 = inlined_call_operand.vmem [shape: f32[512,128], index: 3, kind: output, shape index: {}]  }
   0x1   :  { %s908_s14 = smov 0  }
   0x2 LB: > { %s32_s15 = sadd.s32 1, %s878_s13  ;;  %p724_p0 = scmp.ge.s32.totalorder %s882_s14, 1  ;;  %s882_s14 = sphi %s908_s14, %s13_s14   ;;  %s878_s13 = sphi %s906_s13, %s1012_s13   ;;  %s874_s12 = sphi %s904_s12, %s1011_s12  }
   0x3   : > { %p34_p1 = scmp.ge.s32.totalorder %s32_s15, 4  ;;  %p188_p2 = scmp.lt.s32.totalorder %s882_s14, 5 }
   0x5   : > { %s1014_s15 = smov (%p34_p1, %s32_s15), 0  ;;  %p189_p3 = pnand %p724_p0, %p188_p2 }
   0x6   : > { %s725_s24 = sshll.u32 (!%p189_p3), %s874_s12, 4 }
   0x7   : > { %192 = sbr.rel (%p189_p3) target bundleno = 208 (0xd0), region = 32  ;;  %p230_p4 = scmp.lt.s32.totalorder (!%p189_p3), %s725_s24, 63 }
   0xc   : > { %v810_v0 = vld [vmem:[%s1008_s1 + $0x38] sm:$0xff]  ;;  %v809_v1 = vld [vmem:[%s1008_s1 + $0x30] sm:$0xff]  ;;  %v808_v2 = vld [vmem:[%s1008_s1 + $0x28] sm:$0xff]  ;;  %s1016_s24 = smov (!%p230_p4, %s725_s24), 63 }
   0xd   : > { %423 = vmatpush.bf16.msra.mxu0 %v810_v0  ;;  %811 = vmatpush.bf16.msra.mxu1 %v810_v0  ;;  %v807_v3 = vld [vmem:[%s1008_s1 + $0x20] sm:$0xff]  ;;  %v806_v4 = vld [vmem:[%s1008_s1 + $0x18] sm:$0xff]  ;;  %v805_v5 = vld [vmem:[%s1008_s1 + $0x10] sm:$0xff]  ;;  %s726_s4 = sshll.u32 %s1016_s24, 2  ;;  %s728_s12 = sshll.u32 %s1016_s24, 3 }
   0xe   : > { %812 = vmatpush.bf16.msra.mxu2 %v810_v0  ;;  %813 = vmatpush.bf16.msra.mxu3 %v810_v0  ;;  %v804_v6 = vld [vmem:[%s1008_s1 + $0x8] sm:$0xff]  ;;  %v803_v7 = vld [vmem:[%s1008_s1] sm:$0xff]  ;;  %s236_s9 = scalar_lea.vmem %s1007_s0, %s726_s4  ;;  %s966_s18 = scalar_lea.vmem %s1010_s3, %s728_s12 }
   0xf   : > { %v795_v8 = vld [vmem:[%s236_s9] sm:$0xff]  ;;  %v797_v9 = vld [vmem:[%s236_s9 + $0x10] sm:$0xff]  ;;  %v796_v12 = vld [vmem:[%s236_s9 + $0x8] sm:$0xff] }
  0x10   : > { %v799_v10 = vld [vmem:[%s236_s9 + $0x20] sm:$0xff]  ;;  %v801_v11 = vld [vmem:[%s236_s9 + $0x30] sm:$0xff]  ;;  %v798_v13 = vld [vmem:[%s236_s9 + $0x18] sm:$0xff] }
  0x11   : > { %424 = vmatpush.bf16.msra.mxu0 %v809_v1  ;;  %814 = vmatpush.bf16.msra.mxu1 %v809_v1  ;;  %v800_v14 = vld [vmem:[%s236_s9 + $0x28] sm:$0xff]  ;;  %v802_v15 = vld [vmem:[%s236_s9 + $0x38] sm:$0xff]  ;;  %v958_v16 = vld [vmem:[%s1009_s2] ss:$0 sm:$0xff] }
  0x12   : > { %815 = vmatpush.bf16.msra.mxu2 %v809_v1  ;;  %816 = vmatpush.bf16.msra.mxu3 %v809_v1 }
  0x15   : > { %425 = vmatpush.bf16.msra.mxu0 %v808_v2  ;;  %817 = vmatpush.bf16.msra.mxu1 %v808_v2 }
  0x16   : > { %818 = vmatpush.bf16.msra.mxu2 %v808_v2  ;;  %819 = vmatpush.bf16.msra.mxu3 %v808_v2 }
  0x19   : > { %426 = vmatpush.bf16.msra.mxu0 %v807_v3  ;;  %820 = vmatpush.bf16.msra.mxu1 %v807_v3 }
  0x1a   : > { %821 = vmatpush.bf16.msra.mxu2 %v807_v3  ;;  %822 = vmatpush.bf16.msra.mxu3 %v807_v3 }
  0x1d   : > { %427 = vmatpush.bf16.msra.mxu0 %v806_v4  ;;  %823 = vmatpush.bf16.msra.mxu1 %v806_v4 }
  0x1e   : > { %824 = vmatpush.bf16.msra.mxu2 %v806_v4  ;;  %825 = vmatpush.bf16.msra.mxu3 %v806_v4 }
  0x21   : > { %428 = vmatpush.bf16.msra.mxu0 %v805_v5  ;;  %826 = vmatpush.bf16.msra.mxu1 %v805_v5 }
  0x22   : > { %827 = vmatpush.bf16.msra.mxu2 %v805_v5  ;;  %828 = vmatpush.bf16.msra.mxu3 %v805_v5 }
  0x25   : > { %429 = vmatpush.bf16.msra.mxu0 %v804_v6  ;;  %829 = vmatpush.bf16.msra.mxu1 %v804_v6 }
  0x26   : > { %830 = vmatpush.bf16.msra.mxu2 %v804_v6  ;;  %831 = vmatpush.bf16.msra.mxu3 %v804_v6 }
  0x29   : > { %430 = vmatpush.bf16.msra.mxu0 %v803_v7  ;;  %832 = vmatpush.bf16.msra.mxu1 %v803_v7 }
  0x2a   : > { %833 = vmatpush.bf16.msra.mxu2 %v803_v7  ;;  %834 = vmatpush.bf16.msra.mxu3 %v803_v7 }
  0x2c   : > { %431 = vmatmul.bf16.vlgmr.msra.gmra.mxu0 %v795_v8  ;;  %441 = vmatmul.bf16.vlgmr.msra.gmra.mxu1 %v797_v9 }
  0x2d   : > { %451 = vmatmul.bf16.vlgmr.msra.gmra.mxu2 %v799_v10  ;;  %461 = vmatmul.bf16.vlgmr.msra.gmra.mxu3 %v801_v11 }
  0x3c   : > { %436 = vmatmul.bf16.gmra.mxu0 %v796_v12  ;;  %446 = vmatmul.bf16.gmra.mxu1 %v798_v13 }
  0x3d   : > { %456 = vmatmul.bf16.gmra.mxu2 %v800_v14  ;;  %466 = vmatmul.bf16.gmra.mxu3 %v802_v15 }
  0xa9   : > { %v432_v17 = vpop.f32.mrf.mxu0  ;;  %v442_v18 = vpop.f32.mrf.mxu1 }
  0xaa   : > { %v527_v19 = vadd.f32 %v958_v16, %v432_v17  ;;  %v531_v20 = vadd.f32 %v958_v16, %v442_v18 }
  0xac   : > { %vm543_vm0 = vcmp.ge.f32.partialorder %v527_v19, 0.0  ;;  %v559_v21 = vmul.f32 0.1, %v527_v19  ;;  %vm547_vm1 = vcmp.ge.f32.partialorder %v531_v20, 0.0  ;;  %v563_v22 = vmul.f32 0.1, %v531_v20 }
  0xae   : > { %v575_v23 = vsel %vm543_vm0, %v527_v19, %v559_v21  ;;  %v579_v24 = vsel %vm547_vm1, %v531_v20, %v563_v22 }
  0xaf   : > { %591 = vst [vmem:[%s966_s18] sm:$0xff] %v575_v23 }
  0xb0   : > { %595 = vst [vmem:[%s966_s18 + $0x20] sm:$0xff] %v579_v24  ;;  %v452_v25 = vpop.f32.mrf.mxu2  ;;  %v462_v26 = vpop.f32.mrf.mxu3 }
  0xb1   : > { %v535_v27 = vadd.f32 %v958_v16, %v452_v25  ;;  %v539_v28 = vadd.f32 %v958_v16, %v462_v26  ;;  %v434_v29 = vpop.f32.mrf.mxu0  ;;  %v444_v30 = vpop.f32.mrf.mxu1 }
  0xb2   : > { %v528_v31 = vadd.f32 %v958_v16, %v434_v29  ;;  %v532_v32 = vadd.f32 %v958_v16, %v444_v30 }
  0xb3   : > { %vm551_vm2 = vcmp.ge.f32.partialorder %v535_v27, 0.0  ;;  %v567_v33 = vmul.f32 0.1, %v535_v27  ;;  %vm555_vm3 = vcmp.ge.f32.partialorder %v539_v28, 0.0  ;;  %v571_v34 = vmul.f32 0.1, %v539_v28 }
  0xb4   : > { %vm544_vm4 = vcmp.ge.f32.partialorder %v528_v31, 0.0  ;;  %v560_v35 = vmul.f32 0.1, %v528_v31  ;;  %vm548_vm5 = vcmp.ge.f32.partialorder %v532_v32, 0.0  ;;  %v564_v36 = vmul.f32 0.1, %v532_v32 }
  0xb5   : > { %v583_v37 = vsel %vm551_vm2, %v535_v27, %v567_v33  ;;  %v587_v38 = vsel %vm555_vm3, %v539_v28, %v571_v34 }
  0xb6   : > { %599 = vst [vmem:[%s966_s18 + $0x40] sm:$0xff] %v583_v37  ;;  %v576_v39 = vsel %vm544_vm4, %v528_v31, %v560_v35  ;;  %v580_v40 = vsel %vm548_vm5, %v532_v32, %v564_v36 }
  0xb7   : > { %603 = vst [vmem:[%s966_s18 + $0x60] sm:$0xff] %v587_v38 }
  0xb8   : > { %592 = vst [vmem:[%s966_s18 + $0x8] sm:$0xff] %v576_v39  ;;  %v454_v41 = vpop.f32.mrf.mxu2  ;;  %v464_v42 = vpop.f32.mrf.mxu3 }
  0xb9   : > { %596 = vst [vmem:[%s966_s18 + $0x28] sm:$0xff] %v580_v40  ;;  %v536_v43 = vadd.f32 %v958_v16, %v454_v41  ;;  %v540_v44 = vadd.f32 %v958_v16, %v464_v42  ;;  %v437_v45 = vpop.f32.mrf.mxu0  ;;  %v447_v46 = vpop.f32.mrf.mxu1 }
  0xba   : > { %v529_v47 = vadd.f32 %v958_v16, %v437_v45  ;;  %v533_v48 = vadd.f32 %v958_v16, %v447_v46 }
  0xbb   : > { %vm552_vm6 = vcmp.ge.f32.partialorder %v536_v43, 0.0  ;;  %v568_v49 = vmul.f32 0.1, %v536_v43  ;;  %vm556_vm7 = vcmp.ge.f32.partialorder %v540_v44, 0.0  ;;  %v572_v50 = vmul.f32 0.1, %v540_v44 }
  0xbc   : > { %vm545_vm8 = vcmp.ge.f32.partialorder %v529_v47, 0.0  ;;  %v561_v51 = vmul.f32 0.1, %v529_v47  ;;  %vm549_vm9 = vcmp.ge.f32.partialorder %v533_v48, 0.0  ;;  %v565_v52 = vmul.f32 0.1, %v533_v48 }
  0xbd   : > { %v584_v53 = vsel %vm552_vm6, %v536_v43, %v568_v49  ;;  %v588_v54 = vsel %vm556_vm7, %v540_v44, %v572_v50 }
  0xbe   : > { %600 = vst [vmem:[%s966_s18 + $0x48] sm:$0xff] %v584_v53  ;;  %v577_v55 = vsel %vm545_vm8, %v529_v47, %v561_v51  ;;  %v581_v56 = vsel %vm549_vm9, %v533_v48, %v565_v52 }
  0xbf   : > { %604 = vst [vmem:[%s966_s18 + $0x68] sm:$0xff] %v588_v54 }
  0xc0   : > { %593 = vst [vmem:[%s966_s18 + $0x10] sm:$0xff] %v577_v55  ;;  %v457_v57 = vpop.f32.mrf.mxu2  ;;  %v467_v58 = vpop.f32.mrf.mxu3 }
  0xc1   : > { %597 = vst [vmem:[%s966_s18 + $0x30] sm:$0xff] %v581_v56  ;;  %v537_v59 = vadd.f32 %v958_v16, %v457_v57  ;;  %v541_v60 = vadd.f32 %v958_v16, %v467_v58  ;;  %v439_v61 = vpop.f32.mrf.mxu0  ;;  %v449_v62 = vpop.f32.mrf.mxu1 }
  0xc2   : > { %v530_v63 = vadd.f32 %v958_v16, %v439_v61  ;;  %v534_v0 = vadd.f32 %v958_v16, %v449_v62 }
  0xc3   : > { %vm553_vm10 = vcmp.ge.f32.partialorder %v537_v59, 0.0  ;;  %v569_v1 = vmul.f32 0.1, %v537_v59  ;;  %vm557_vm11 = vcmp.ge.f32.partialorder %v541_v60, 0.0  ;;  %v573_v2 = vmul.f32 0.1, %v541_v60 }
  0xc4   : > { %vm546_vm12 = vcmp.ge.f32.partialorder %v530_v63, 0.0  ;;  %v562_v3 = vmul.f32 0.1, %v530_v63  ;;  %vm550_vm13 = vcmp.ge.f32.partialorder %v534_v0, 0.0  ;;  %v566_v4 = vmul.f32 0.1, %v534_v0 }
  0xc5   : > { %v585_v5 = vsel %vm553_vm10, %v537_v59, %v569_v1  ;;  %v589_v6 = vsel %vm557_vm11, %v541_v60, %v573_v2 }
  0xc6   : > { %601 = vst [vmem:[%s966_s18 + $0x50] sm:$0xff] %v585_v5  ;;  %v578_v7 = vsel %vm546_vm12, %v530_v63, %v562_v3  ;;  %v582_v8 = vsel %vm550_vm13, %v534_v0, %v566_v4 }
  0xc7   : > { %605 = vst [vmem:[%s966_s18 + $0x70] sm:$0xff] %v589_v6 }
  0xc8   : > { %594 = vst [vmem:[%s966_s18 + $0x18] sm:$0xff] %v578_v7  ;;  %v459_v9 = vpop.f32.mrf.mxu2  ;;  %v469_v10 = vpop.f32.mrf.mxu3 }
  0xc9   : > { %598 = vst [vmem:[%s966_s18 + $0x38] sm:$0xff] %v582_v8  ;;  %v538_v11 = vadd.f32 %v958_v16, %v459_v9  ;;  %v542_v12 = vadd.f32 %v958_v16, %v469_v10 }
  0xcb   : > { %vm554_vm14 = vcmp.ge.f32.partialorder %v538_v11, 0.0  ;;  %v570_v13 = vmul.f32 0.1, %v538_v11  ;;  %vm558_vm15 = vcmp.ge.f32.partialorder %v542_v12, 0.0  ;;  %v574_v14 = vmul.f32 0.1, %v542_v12 }
  0xcd   : > { %v586_v15 = vsel %vm554_vm14, %v538_v11, %v570_v13  ;;  %v590_v17 = vsel %vm558_vm15, %v542_v12, %v574_v14 }
  0xce   : > { %602 = vst [vmem:[%s966_s18 + $0x58] sm:$0xff] %v586_v15 }
  0xcf   : > { %606 = vst [vmem:[%s966_s18 + $0x78] sm:$0xff] %v590_v17 }
  0xd0 PF: > { %s13_s14 = sadd.s32 1, %s882_s14   ;;  %s1011_s12 = smov %s878_s13 }
  0xd1   : > { %p10_p5 = scmp.ge.s32.totalorder %s13_s14, 6   ;;  %s1012_s13 = smov %s1014_s15 }
  0xd3   :  { %12 = sbr.rel (!%p10_p5) target bundleno = 2 (0x2), region = 76 }

// kernel: minildb_forward.8
= control target key start
LH: loop header
LB: loop body
LE: loop exit
PB: predicated region body
PF: predicated region fallthrough
CT: control target
= control target key end

     0   :  { %s856_s12 = smov 0   ;;  %s858_s13 = smov 0   ;;  %s941_s0 = inlined_call_operand.vmem [shape: bf16[512,128], index: 0, kind: input, shape index: {}]   ;;  %s942_s1 = inlined_call_operand.vmem [shape: bf16[128,128], index: 1, kind: input, shape index: {}]   ;;  %s943_s2 = inlined_call_operand.vmem [shape: f32[1,128], index: 2, kind: input, shape index: {}]   ;;  %s944_s3 = inlined_call_operand.vmem [shape: f32[512,128], index: 3, kind: output, shape index: {}]  }
   0x1   :  { %s860_s14 = smov 0  }
   0x2 LB: > { %s32_s15 = sadd.s32 1, %s830_s13  ;;  %p676_p0 = scmp.ge.s32.totalorder %s834_s14, 1  ;;  %s834_s14 = sphi %s860_s14, %s13_s14   ;;  %s830_s13 = sphi %s858_s13, %s946_s13   ;;  %s826_s12 = sphi %s856_s12, %s945_s12  }
   0x3   : > { %p34_p1 = scmp.ge.s32.totalorder %s32_s15, 4  ;;  %p188_p2 = scmp.lt.s32.totalorder %s834_s14, 5 }
   0x5   : > { %s948_s15 = smov (%p34_p1, %s32_s15), 0  ;;  %p189_p3 = pnand %p676_p0, %p188_p2 }
   0x6   : > { %s677_s24 = sshll.u32 (!%p189_p3), %s826_s12, 4 }
   0x7   : > { %192 = sbr.rel (%p189_p3) target bundleno = 205 (0xcd), region = 32  ;;  %p230_p4 = scmp.lt.s32.totalorder (!%p189_p3), %s677_s24, 63 }
   0xc   : > { %v762_v0 = vld [vmem:[%s942_s1 + $0x38] sm:$0xff]  ;;  %v761_v1 = vld [vmem:[%s942_s1 + $0x30] sm:$0xff]  ;;  %v760_v2 = vld [vmem:[%s942_s1 + $0x28] sm:$0xff]  ;;  %s950_s24 = smov (!%p230_p4, %s677_s24), 63 }
   0xd   : > { %423 = vmatpush.bf16.msra.mxu0 %v762_v0  ;;  %763 = vmatpush.bf16.msra.mxu1 %v762_v0  ;;  %v759_v3 = vld [vmem:[%s942_s1 + $0x20] sm:$0xff]  ;;  %v758_v4 = vld [vmem:[%s942_s1 + $0x18] sm:$0xff]  ;;  %v757_v5 = vld [vmem:[%s942_s1 + $0x10] sm:$0xff]  ;;  %s678_s4 = sshll.u32 %s950_s24, 2  ;;  %s680_s10 = sshll.u32 %s950_s24, 3 }
   0xe   : > { %764 = vmatpush.bf16.msra.mxu2 %v762_v0  ;;  %765 = vmatpush.bf16.msra.mxu3 %v762_v0  ;;  %v756_v6 = vld [vmem:[%s942_s1 + $0x8] sm:$0xff]  ;;  %v755_v7 = vld [vmem:[%s942_s1] sm:$0xff]  ;;  %s236_s9 = scalar_lea.vmem %s941_s0, %s678_s4  ;;  %s914_s18 = scalar_lea.vmem %s944_s3, %s680_s10 }
   0xf   : > { %v747_v8 = vld [vmem:[%s236_s9] sm:$0xff]  ;;  %v749_v9 = vld [vmem:[%s236_s9 + $0x10] sm:$0xff]  ;;  %v748_v12 = vld [vmem:[%s236_s9 + $0x8] sm:$0xff] }
  0x10   : > { %v751_v10 = vld [vmem:[%s236_s9 + $0x20] sm:$0xff]  ;;  %v753_v11 = vld [vmem:[%s236_s9 + $0x30] sm:$0xff]  ;;  %v750_v13 = vld [vmem:[%s236_s9 + $0x18] sm:$0xff] }
  0x11   : > { %424 = vmatpush.bf16.msra.mxu0 %v761_v1  ;;  %766 = vmatpush.bf16.msra.mxu1 %v761_v1  ;;  %v752_v14 = vld [vmem:[%s236_s9 + $0x28] sm:$0xff]  ;;  %v754_v15 = vld [vmem:[%s236_s9 + $0x38] sm:$0xff]  ;;  %v811_v16 = vld [vmem:[%s943_s2] ss:$0 sm:$0xff] }
  0x12   : > { %767 = vmatpush.bf16.msra.mxu2 %v761_v1  ;;  %768 = vmatpush.bf16.msra.mxu3 %v761_v1 }
  0x15   : > { %425 = vmatpush.bf16.msra.mxu0 %v760_v2  ;;  %769 = vmatpush.bf16.msra.mxu1 %v760_v2 }
  0x16   : > { %770 = vmatpush.bf16.msra.mxu2 %v760_v2  ;;  %771 = vmatpush.bf16.msra.mxu3 %v760_v2 }
  0x19   : > { %426 = vmatpush.bf16.msra.mxu0 %v759_v3  ;;  %772 = vmatpush.bf16.msra.mxu1 %v759_v3 }
  0x1a   : > { %773 = vmatpush.bf16.msra.mxu2 %v759_v3  ;;  %774 = vmatpush.bf16.msra.mxu3 %v759_v3 }
  0x1d   : > { %427 = vmatpush.bf16.msra.mxu0 %v758_v4  ;;  %775 = vmatpush.bf16.msra.mxu1 %v758_v4 }
  0x1e   : > { %776 = vmatpush.bf16.msra.mxu2 %v758_v4  ;;  %777 = vmatpush.bf16.msra.mxu3 %v758_v4 }
  0x21   : > { %428 = vmatpush.bf16.msra.mxu0 %v757_v5  ;;  %778 = vmatpush.bf16.msra.mxu1 %v757_v5 }
  0x22   : > { %779 = vmatpush.bf16.msra.mxu2 %v757_v5  ;;  %780 = vmatpush.bf16.msra.mxu3 %v757_v5 }
  0x25   : > { %429 = vmatpush.bf16.msra.mxu0 %v756_v6  ;;  %781 = vmatpush.bf16.msra.mxu1 %v756_v6 }
  0x26   : > { %782 = vmatpush.bf16.msra.mxu2 %v756_v6  ;;  %783 = vmatpush.bf16.msra.mxu3 %v756_v6 }
  0x29   : > { %430 = vmatpush.bf16.msra.mxu0 %v755_v7  ;;  %784 = vmatpush.bf16.msra.mxu1 %v755_v7 }
  0x2a   : > { %785 = vmatpush.bf16.msra.mxu2 %v755_v7  ;;  %786 = vmatpush.bf16.msra.mxu3 %v755_v7 }
  0x2c   : > { %431 = vmatmul.bf16.vlgmr.msra.gmra.mxu0 %v747_v8  ;;  %441 = vmatmul.bf16.vlgmr.msra.gmra.mxu1 %v749_v9 }
  0x2d   : > { %451 = vmatmul.bf16.vlgmr.msra.gmra.mxu2 %v751_v10  ;;  %461 = vmatmul.bf16.vlgmr.msra.gmra.mxu3 %v753_v11 }
  0x3c   : > { %436 = vmatmul.bf16.gmra.mxu0 %v748_v12  ;;  %446 = vmatmul.bf16.gmra.mxu1 %v750_v13 }
  0x3d   : > { %456 = vmatmul.bf16.gmra.mxu2 %v752_v14  ;;  %466 = vmatmul.bf16.gmra.mxu3 %v754_v15 }
  0xa9   : > { %v432_v17 = vpop.f32.mrf.mxu0  ;;  %v442_v18 = vpop.f32.mrf.mxu1 }
  0xaa   : > { %v527_v19 = vadd.f32 %v811_v16, %v432_v17  ;;  %v531_v20 = vadd.f32 %v811_v16, %v442_v18 }
  0xac   : > { %543 = vst [vmem:[%s914_s18] sm:$0xff] %v527_v19 }
  0xad   : > { %547 = vst [vmem:[%s914_s18 + $0x20] sm:$0xff] %v531_v20 }
  0xb0   : > { %v452_v21 = vpop.f32.mrf.mxu2  ;;  %v462_v22 = vpop.f32.mrf.mxu3 }
  0xb1   : > { %v535_v23 = vadd.f32 %v811_v16, %v452_v21  ;;  %v539_v24 = vadd.f32 %v811_v16, %v462_v22  ;;  %v434_v25 = vpop.f32.mrf.mxu0  ;;  %v444_v26 = vpop.f32.mrf.mxu1 }
  0xb2   : > { %v528_v27 = vadd.f32 %v811_v16, %v434_v25  ;;  %v532_v28 = vadd.f32 %v811_v16, %v444_v26 }
  0xb3   : > { %551 = vst [vmem:[%s914_s18 + $0x40] sm:$0xff] %v535_v23 }
  0xb4   : > { %555 = vst [vmem:[%s914_s18 + $0x60] sm:$0xff] %v539_v24 }
  0xb5   : > { %544 = vst [vmem:[%s914_s18 + $0x8] sm:$0xff] %v528_v27 }
  0xb6   : > { %548 = vst [vmem:[%s914_s18 + $0x28] sm:$0xff] %v532_v28 }
  0xb8   : > { %v454_v29 = vpop.f32.mrf.mxu2  ;;  %v464_v30 = vpop.f32.mrf.mxu3 }
  0xb9   : > { %v536_v31 = vadd.f32 %v811_v16, %v454_v29  ;;  %v540_v32 = vadd.f32 %v811_v16, %v464_v30  ;;  %v437_v33 = vpop.f32.mrf.mxu0  ;;  %v447_v34 = vpop.f32.mrf.mxu1 }
  0xba   : > { %v529_v35 = vadd.f32 %v811_v16, %v437_v33  ;;  %v533_v36 = vadd.f32 %v811_v16, %v447_v34 }
  0xbb   : > { %552 = vst [vmem:[%s914_s18 + $0x48] sm:$0xff] %v536_v31 }
  0xbc   : > { %556 = vst [vmem:[%s914_s18 + $0x68] sm:$0xff] %v540_v32 }
  0xbd   : > { %545 = vst [vmem:[%s914_s18 + $0x10] sm:$0xff] %v529_v35 }
  0xbe   : > { %549 = vst [vmem:[%s914_s18 + $0x30] sm:$0xff] %v533_v36 }
  0xc0   : > { %v457_v37 = vpop.f32.mrf.mxu2  ;;  %v467_v38 = vpop.f32.mrf.mxu3 }
  0xc1   : > { %v537_v39 = vadd.f32 %v811_v16, %v457_v37  ;;  %v541_v40 = vadd.f32 %v811_v16, %v467_v38  ;;  %v439_v41 = vpop.f32.mrf.mxu0  ;;  %v449_v42 = vpop.f32.mrf.mxu1 }
  0xc2   : > { %v530_v43 = vadd.f32 %v811_v16, %v439_v41  ;;  %v534_v44 = vadd.f32 %v811_v16, %v449_v42 }
  0xc3   : > { %553 = vst [vmem:[%s914_s18 + $0x50] sm:$0xff] %v537_v39 }
  0xc4   : > { %557 = vst [vmem:[%s914_s18 + $0x70] sm:$0xff] %v541_v40 }
  0xc5   : > { %546 = vst [vmem:[%s914_s18 + $0x18] sm:$0xff] %v530_v43 }
  0xc6   : > { %550 = vst [vmem:[%s914_s18 + $0x38] sm:$0xff] %v534_v44 }
  0xc8   : > { %v459_v45 = vpop.f32.mrf.mxu2  ;;  %v469_v46 = vpop.f32.mrf.mxu3 }
  0xc9   : > { %v538_v47 = vadd.f32 %v811_v16, %v459_v45  ;;  %v542_v48 = vadd.f32 %v811_v16, %v469_v46 }
  0xcb   : > { %554 = vst [vmem:[%s914_s18 + $0x58] sm:$0xff] %v538_v47 }
  0xcc   : > { %558 = vst [vmem:[%s914_s18 + $0x78] sm:$0xff] %v542_v48 }
  0xcd PF: > { %s13_s14 = sadd.s32 1, %s834_s14   ;;  %s945_s12 = smov %s830_s13 }
  0xce   : > { %p10_p5 = scmp.ge.s32.totalorder %s13_s14, 6   ;;  %s946_s13 = smov %s948_s15 }
  0xd0   :  { %12 = sbr.rel (!%p10_p5) target bundleno = 2 (0x2), region = 76 }

// kernel: minildb_forward.9
= control target key start
LH: loop header
LB: loop body
LE: loop exit
PB: predicated region body
PF: predicated region fallthrough
CT: control target
= control target key end

     0   :  { %s814_s0 = inlined_call_operand.vmem [shape: f32[64,512], index: 0, kind: input, shape index: {}]   ;;  %s815_s1 = inlined_call_operand.vmem [shape: f32[64,512], index: 1, kind: input, shape index: {}]   ;;  %s816_s2 = inlined_call_operand.vmem [shape: f32[64,512], index: 2, kind: input, shape index: {}]   ;;  %s817_s3 = inlined_call_operand.vmem [shape: f32[64,512], index: 3, kind: input, shape index: {}]   ;;  %s818_s4 = inlined_call_operand.vmem [shape: f32[64,512], index: 4, kind: output, shape index: {}]  }
   0x1   :  { %v17_v0 = vld [vmem:[%s814_s0] sm:$0xff]  ;;  %v18_v5 = vld [vmem:[%s814_s0 + $0x8] sm:$0xff]  ;;  %v19_v10 = vld [vmem:[%s814_s0 + $0x10] sm:$0xff] }
   0x2   :  { %v49_v1 = vld [vmem:[%s815_s1] sm:$0xff]  ;;  %v50_v6 = vld [vmem:[%s815_s1 + $0x8] sm:$0xff]  ;;  %v51_v14 = vld [vmem:[%s815_s1 + $0x10] sm:$0xff] }
   0x3   :  { %v113_v2 = vld [vmem:[%s816_s2] sm:$0xff]  ;;  %v81_v3 = vadd.f32 %v49_v1, %v17_v0  ;;  %v82_v8 = vadd.f32 %v50_v6, %v18_v5  ;;  %v114_v9 = vld [vmem:[%s816_s2 + $0x8] sm:$0xff]  ;;  %v115_v15 = vld [vmem:[%s816_s2 + $0x10] sm:$0xff]  ;;  %v83_v16 = vadd.f32 %v51_v14, %v19_v10 }
   0x4   :  { %v145_v4 = vmul.f32 %v113_v2, %v17_v0  ;;  %v209_v7 = vld [vmem:[%s817_s3] sm:$0xff]  ;;  %v146_v12 = vmul.f32 %v114_v9, %v18_v5  ;;  %v210_v13 = vld [vmem:[%s817_s3 + $0x8] sm:$0xff]  ;;  %v147_v17 = vmul.f32 %v115_v15, %v19_v10  ;;  %v20_v18 = vld [vmem:[%s814_s0 + $0x18] sm:$0xff] }
   0x5   :  { %v52_v19 = vld [vmem:[%s815_s1 + $0x18] sm:$0xff]  ;;  %v211_v23 = vld [vmem:[%s817_s3 + $0x10] sm:$0xff]  ;;  %v21_v26 = vld [vmem:[%s814_s0 + $0x20] sm:$0xff] }
   0x6   :  { %v177_v11 = vadd.f32 %v145_v4, %v81_v3  ;;  %v116_v20 = vld [vmem:[%s816_s2 + $0x18] sm:$0xff]  ;;  %v178_v22 = vadd.f32 %v146_v12, %v82_v8  ;;  %v84_v24 = vadd.f32 %v52_v19, %v20_v18  ;;  %v53_v27 = vld [vmem:[%s815_s1 + $0x20] sm:$0xff]  ;;  %v179_v28 = vadd.f32 %v147_v17, %v83_v16  ;;  %v22_v32 = vld [vmem:[%s814_s0 + $0x28] sm:$0xff] }
   0x7   :  { %v148_v25 = vmul.f32 %v116_v20, %v20_v18  ;;  %v212_v29 = vld [vmem:[%s817_s3 + $0x18] sm:$0xff]  ;;  %v85_v30 = vadd.f32 %v53_v27, %v21_v26  ;;  %v117_v31 = vld [vmem:[%s816_s2 + $0x20] sm:$0xff]  ;;  %v54_v37 = vld [vmem:[%s815_s1 + $0x28] sm:$0xff] }
   0x8   :  { %v241_v21 = vadd.f32 %v209_v7, %v177_v11  ;;  %v242_v33 = vadd.f32 %v210_v13, %v178_v22  ;;  %v149_v35 = vmul.f32 %v117_v31, %v21_v26  ;;  %v213_v36 = vld [vmem:[%s817_s3 + $0x20] sm:$0xff]  ;;  %v118_v38 = vld [vmem:[%s816_s2 + $0x28] sm:$0xff]  ;;  %v243_v39 = vadd.f32 %v211_v23, %v179_v28  ;;  %v23_v42 = vld [vmem:[%s814_s0 + $0x30] sm:$0xff] }
   0x9   :  { %v180_v34 = vadd.f32 %v148_v25, %v84_v24  ;;  %v86_v40 = vadd.f32 %v54_v37, %v22_v32  ;;  %v150_v41 = vmul.f32 %v118_v38, %v22_v32  ;;  %v55_v43 = vld [vmem:[%s815_s1 + $0x30] sm:$0xff]  ;;  %v214_v47 = vld [vmem:[%s817_s3 + $0x28] sm:$0xff]  ;;  %v24_v50 = vld [vmem:[%s814_s0 + $0x38] sm:$0xff] }
   0xa   :  { %273 = vst [vmem:[%s818_s4] sm:$0xff] %v241_v21  ;;  %v119_v44 = vld [vmem:[%s816_s2 + $0x30] sm:$0xff]  ;;  %v181_v46 = vadd.f32 %v149_v35, %v85_v30  ;;  %v87_v48 = vadd.f32 %v55_v43, %v23_v42  ;;  %v56_v51 = vld [vmem:[%s815_s1 + $0x38] sm:$0xff]  ;;  %v25_v56 = vld [vmem:[%s814_s0 + $0x40] sm:$0xff] }
   0xb   :  { %274 = vst [vmem:[%s818_s4 + $0x8] sm:$0xff] %v242_v33  ;;  %v244_v45 = vadd.f32 %v212_v29, %v180_v34  ;;  %v151_v49 = vmul.f32 %v119_v44, %v23_v42  ;;  %v182_v52 = vadd.f32 %v150_v41, %v86_v40  ;;  %v215_v53 = vld [vmem:[%s817_s3 + $0x30] sm:$0xff]  ;;  %v88_v54 = vadd.f32 %v56_v51, %v24_v50  ;;  %v120_v55 = vld [vmem:[%s816_s2 + $0x38] sm:$0xff]  ;;  %v57_v61 = vld [vmem:[%s815_s1 + $0x40] sm:$0xff] }
   0xc   :  { %275 = vst [vmem:[%s818_s4 + $0x10] sm:$0xff] %v243_v39  ;;  %v245_v57 = vadd.f32 %v213_v36, %v181_v46  ;;  %v152_v59 = vmul.f32 %v120_v55, %v24_v50  ;;  %v216_v60 = vld [vmem:[%s817_s3 + $0x38] sm:$0xff]  ;;  %v121_v62 = vld [vmem:[%s816_s2 + $0x40] sm:$0xff]  ;;  %v89_v0 = vadd.f32 %v57_v61, %v25_v56  ;;  %v26_v2 = vld [vmem:[%s814_s0 + $0x48] sm:$0xff] }
   0xd   :  { %276 = vst [vmem:[%s818_s4 + $0x18] sm:$0xff] %v244_v45  ;;  %v183_v58 = vadd.f32 %v151_v49, %v87_v48  ;;  %v246_v63 = vadd.f32 %v214_v47, %v182_v52  ;;  %v153_v1 = vmul.f32 %v121_v62, %v25_v56  ;;  %v58_v3 = vld [vmem:[%s815_s1 + $0x48] sm:$0xff]  ;;  %v217_v7 = vld [vmem:[%s817_s3 + $0x40] sm:$0xff]  ;;  %v27_v10 = vld [vmem:[%s814_s0 + $0x50] sm:$0xff] }
   0xe   :  { %v122_v4 = vld [vmem:[%s816_s2 + $0x48] sm:$0xff]  ;;  %277 = vst [vmem:[%s818_s4 + $0x20] sm:$0xff] %v245_v57  ;;  %v184_v6 = vadd.f32 %v152_v59, %v88_v54  ;;  %v90_v8 = vadd.f32 %v58_v3, %v26_v2  ;;  %v59_v11 = vld [vmem:[%s815_s1 + $0x50] sm:$0xff]  ;;  %v28_v16 = vld [vmem:[%s814_s0 + $0x58] sm:$0xff] }
   0xf   :  { %v247_v5 = vadd.f32 %v215_v53, %v183_v58  ;;  %v154_v9 = vmul.f32 %v122_v4, %v26_v2  ;;  %278 = vst [vmem:[%s818_s4 + $0x28] sm:$0xff] %v246_v63  ;;  %v185_v12 = vadd.f32 %v153_v1, %v89_v0  ;;  %v218_v13 = vld [vmem:[%s817_s3 + $0x48] sm:$0xff]  ;;  %v91_v14 = vadd.f32 %v59_v11, %v27_v10  ;;  %v123_v15 = vld [vmem:[%s816_s2 + $0x50] sm:$0xff]  ;;  %v60_v21 = vld [vmem:[%s815_s1 + $0x58] sm:$0xff] }
  0x10   :  { %v248_v17 = vadd.f32 %v216_v60, %v184_v6  ;;  %v155_v19 = vmul.f32 %v123_v15, %v27_v10  ;;  %v219_v20 = vld [vmem:[%s817_s3 + $0x50] sm:$0xff]  ;;  %v124_v22 = vld [vmem:[%s816_s2 + $0x58] sm:$0xff]  ;;  %v92_v24 = vadd.f32 %v60_v21, %v28_v16  ;;  %v29_v26 = vld [vmem:[%s814_s0 + $0x60] sm:$0xff] }
  0x11   :  { %279 = vst [vmem:[%s818_s4 + $0x30] sm:$0xff] %v247_v5  ;;  %v186_v18 = vadd.f32 %v154_v9, %v90_v8  ;;  %v249_v23 = vadd.f32 %v217_v7, %v185_v12  ;;  %v156_v25 = vmul.f32 %v124_v22, %v28_v16  ;;  %v61_v27 = vld [vmem:[%s815_s1 + $0x60] sm:$0xff]  ;;  %v220_v31 = vld [vmem:[%s817_s3 + $0x58] sm:$0xff]  ;;  %v30_v34 = vld [vmem:[%s814_s0 + $0x68] sm:$0xff] }
  0x12   :  { %v125_v28 = vld [vmem:[%s816_s2 + $0x60] sm:$0xff]  ;;  %280 = vst [vmem:[%s818_s4 + $0x38] sm:$0xff] %v248_v17  ;;  %v187_v30 = vadd.f32 %v155_v19, %v91_v14  ;;  %v93_v32 = vadd.f32 %v61_v27, %v29_v26  ;;  %v62_v35 = vld [vmem:[%s815_s1 + $0x68] sm:$0xff]  ;;  %v31_v40 = vld [vmem:[%s814_s0 + $0x70] sm:$0xff] }
  0x13   :  { %v250_v29 = vadd.f32 %v218_v13, %v186_v18  ;;  %v157_v33 = vmul.f32 %v125_v28, %v29_v26  ;;  %281 = vst [vmem:[%s818_s4 + $0x40] sm:$0xff] %v249_v23  ;;  %v188_v36 = vadd.f32 %v156_v25, %v92_v24  ;;  %v221_v37 = vld [vmem:[%s817_s3 + $0x60] sm:$0xff]  ;;  %v94_v38 = vadd.f32 %v62_v35, %v30_v34  ;;  %v126_v39 = vld [vmem:[%s816_s2 + $0x68] sm:$0xff]  ;;  %v63_v45 = vld [vmem:[%s815_s1 + $0x70] sm:$0xff] }
  0x14   :  { %v251_v41 = vadd.f32 %v219_v20, %v187_v30  ;;  %v158_v43 = vmul.f32 %v126_v39, %v30_v34  ;;  %v222_v44 = vld [vmem:[%s817_s3 + $0x68] sm:$0xff]  ;;  %v127_v46 = vld [vmem:[%s816_s2 + $0x70] sm:$0xff]  ;;  %v95_v48 = vadd.f32 %v63_v45, %v31_v40  ;;  %v32_v50 = vld [vmem:[%s814_s0 + $0x78] sm:$0xff] }
  0x15   :  { %282 = vst [vmem:[%s818_s4 + $0x48] sm:$0xff] %v250_v29  ;;  %v189_v42 = vadd.f32 %v157_v33, %v93_v32  ;;  %v252_v47 = vadd.f32 %v220_v31, %v188_v36  ;;  %v159_v49 = vmul.f32 %v127_v46, %v31_v40  ;;  %v64_v51 = vld [vmem:[%s815_s1 + $0x78] sm:$0xff]  ;;  %v223_v55 = vld [vmem:[%s817_s3 + $0x70] sm:$0xff]  ;;  %v33_v58 = vld [vmem:[%s814_s0 + $0x80] sm:$0xff] }
  0x16   :  { %v128_v52 = vld [vmem:[%s816_s2 + $0x78] sm:$0xff]  ;;  %283 = vst [vmem:[%s818_s4 + $0x50] sm:$0xff] %v251_v41  ;;  %v190_v54 = vadd.f32 %v158_v43, %v94_v38  ;;  %v96_v56 = vadd.f32 %v64_v51, %v32_v50  ;;  %v65_v59 = vld [vmem:[%s815_s1 + $0x80] sm:$0xff]  ;;  %v34_v0 = vld [vmem:[%s814_s0 + $0x88] sm:$0xff] }
  0x17   :  { %v253_v53 = vadd.f32 %v221_v37, %v189_v42  ;;  %v160_v57 = vmul.f32 %v128_v52, %v32_v50  ;;  %284 = vst [vmem:[%s818_s4 + $0x58] sm:$0xff] %v252_v47  ;;  %v191_v60 = vadd.f32 %v159_v49, %v95_v48  ;;  %v224_v61 = vld [vmem:[%s817_s3 + $0x78] sm:$0xff]  ;;  %v97_v62 = vadd.f32 %v65_v59, %v33_v58  ;;  %v129_v63 = vld [vmem:[%s816_s2 + $0x80] sm:$0xff]  ;;  %v66_v5 = vld [vmem:[%s815_s1 + $0x88] sm:$0xff] }
  0x18   :  { %v254_v1 = vadd.f32 %v222_v44, %v190_v54  ;;  %v161_v3 = vmul.f32 %v129_v63, %v33_v58  ;;  %v225_v4 = vld [vmem:[%s817_s3 + $0x80] sm:$0xff]  ;;  %v130_v6 = vld [vmem:[%s816_s2 + $0x88] sm:$0xff]  ;;  %v98_v8 = vadd.f32 %v66_v5, %v34_v0  ;;  %v35_v10 = vld [vmem:[%s814_s0 + $0x90] sm:$0xff] }
  0x19   :  { %285 = vst [vmem:[%s818_s4 + $0x60] sm:$0xff] %v253_v53  ;;  %v192_v2 = vadd.f32 %v160_v57, %v96_v56  ;;  %v255_v7 = vadd.f32 %v223_v55, %v191_v60  ;;  %v162_v9 = vmul.f32 %v130_v6, %v34_v0  ;;  %v67_v11 = vld [vmem:[%s815_s1 + $0x90] sm:$0xff]  ;;  %v226_v15 = vld [vmem:[%s817_s3 + $0x88] sm:$0xff]  ;;  %v36_v18 = vld [vmem:[%s814_s0 + $0x98] sm:$0xff] }
  0x1a   :  { %v131_v12 = vld [vmem:[%s816_s2 + $0x90] sm:$0xff]  ;;  %286 = vst [vmem:[%s818_s4 + $0x68] sm:$0xff] %v254_v1  ;;  %v193_v14 = vadd.f32 %v161_v3, %v97_v62  ;;  %v99_v16 = vadd.f32 %v67_v11, %v35_v10  ;;  %v68_v19 = vld [vmem:[%s815_s1 + $0x98] sm:$0xff]  ;;  %v37_v24 = vld [vmem:[%s814_s0 + $0xa0] sm:$0xff] }
  0x1b   :  { %v256_v13 = vadd.f32 %v224_v61, %v192_v2  ;;  %v163_v17 = vmul.f32 %v131_v12, %v35_v10  ;;  %287 = vst [vmem:[%s818_s4 + $0x70] sm:$0xff] %v255_v7  ;;  %v194_v20 = vadd.f32 %v162_v9, %v98_v8  ;;  %v227_v21 = vld [vmem:[%s817_s3 + $0x90] sm:$0xff]  ;;  %v100_v22 = vadd.f32 %v68_v19, %v36_v18  ;;  %v132_v23 = vld [vmem:[%s816_s2 + $0x98] sm:$0xff]  ;;  %v69_v29 = vld [vmem:[%s815_s1 + $0xa0] sm:$0xff] }
  0x1c   :  { %v257_v25 = vadd.f32 %v225_v4, %v193_v14  ;;  %v164_v27 = vmul.f32 %v132_v23, %v36_v18  ;;  %v228_v28 = vld [vmem:[%s817_s3 + $0x98] sm:$0xff]  ;;  %v133_v30 = vld [vmem:[%s816_s2 + $0xa0] sm:$0xff]  ;;  %v101_v32 = vadd.f32 %v69_v29, %v37_v24  ;;  %v38_v34 = vld [vmem:[%s814_s0 + $0xa8] sm:$0xff] }
  0x1d   :  { %288 = vst [vmem:[%s818_s4 + $0x78] sm:$0xff] %v256_v13  ;;  %v195_v26 = vadd.f32 %v163_v17, %v99_v16  ;;  %v258_v31 = vadd.f32 %v226_v15, %v194_v20  ;;  %v165_v33 = vmul.f32 %v133_v30, %v37_v24  ;;  %v70_v35 = vld [vmem:[%s815_s1 + $0xa8] sm:$0xff]  ;;  %v229_v39 = vld [vmem:[%s817_s3 + $0xa0] sm:$0xff]  ;;  %v39_v42 = vld [vmem:[%s814_s0 + $0xb0] sm:$0xff] }
  0x1e   :  { %v134_v36 = vld [vmem:[%s816_s2 + $0xa8] sm:$0xff]  ;;  %289 = vst [vmem:[%s818_s4 + $0x80] sm:$0xff] %v257_v25  ;;  %v196_v38 = vadd.f32 %v164_v27, %v100_v22  ;;  %v102_v40 = vadd.f32 %v70_v35, %v38_v34  ;;  %v71_v43 = vld [vmem:[%s815_s1 + $0xb0] sm:$0xff]  ;;  %v40_v48 = vld [vmem:[%s814_s0 + $0xb8] sm:$0xff] }
  0x1f   :  { %v259_v37 = vadd.f32 %v227_v21, %v195_v26  ;;  %v166_v41 = vmul.f32 %v134_v36, %v38_v34  ;;  %290 = vst [vmem:[%s818_s4 + $0x88] sm:$0xff] %v258_v31  ;;  %v197_v44 = vadd.f32 %v165_v33, %v101_v32  ;;  %v230_v45 = vld [vmem:[%s817_s3 + $0xa8] sm:$0xff]  ;;  %v103_v46 = vadd.f32 %v71_v43, %v39_v42  ;;  %v135_v47 = vld [vmem:[%s816_s2 + $0xb0] sm:$0xff]  ;;  %v72_v53 = vld [vmem:[%s815_s1 + $0xb8] sm:$0xff] }
  0x20   :  { %v260_v49 = vadd.f32 %v228_v28, %v196_v38  ;;  %v167_v51 = vmul.f32 %v135_v47, %v39_v42  ;;  %v231_v52 = vld [vmem:[%s817_s3 + $0xb0] sm:$0xff]  ;;  %v136_v54 = vld [vmem:[%s816_s2 + $0xb8] sm:$0xff]  ;;  %v104_v56 = vadd.f32 %v72_v53, %v40_v48  ;;  %v41_v58 = vld [vmem:[%s814_s0 + $0xc0] sm:$0xff] }
  0x21   :  { %291 = vst [vmem:[%s818_s4 + $0x90] sm:$0xff] %v259_v37  ;;  %v198_v50 = vadd.f32 %v166_v41, %v102_v40  ;;  %v261_v55 = vadd.f32 %v229_v39, %v197_v44  ;;  %v168_v57 = vmul.f32 %v136_v54, %v40_v48  ;;  %v73_v59 = vld [vmem:[%s815_s1 + $0xc0] sm:$0xff]  ;;  %v232_v63 = vld [vmem:[%s817_s3 + $0xb8] sm:$0xff]  ;;  %v42_v2 = vld [vmem:[%s814_s0 + $0xc8] sm:$0xff] }
  0x22   :  { %v137_v60 = vld [vmem:[%s816_s2 + $0xc0] sm:$0xff]  ;;  %292 = vst [vmem:[%s818_s4 + $0x98] sm:$0xff] %v260_v49  ;;  %v199_v62 = vadd.f32 %v167_v51, %v103_v46  ;;  %v105_v0 = vadd.f32 %v73_v59, %v41_v58  ;;  %v74_v3 = vld [vmem:[%s815_s1 + $0xc8] sm:$0xff]  ;;  %v43_v8 = vld [vmem:[%s814_s0 + $0xd0] sm:$0xff] }
  0x23   :  { %v262_v61 = vadd.f32 %v230_v45, %v198_v50  ;;  %v169_v1 = vmul.f32 %v137_v60, %v41_v58  ;;  %293 = vst [vmem:[%s818_s4 + $0xa0] sm:$0xff] %v261_v55  ;;  %v200_v4 = vadd.f32 %v168_v57, %v104_v56  ;;  %v233_v5 = vld [vmem:[%s817_s3 + $0xc0] sm:$0xff]  ;;  %v106_v6 = vadd.f32 %v74_v3, %v42_v2  ;;  %v138_v7 = vld [vmem:[%s816_s2 + $0xc8] sm:$0xff]  ;;  %v75_v13 = vld [vmem:[%s815_s1 + $0xd0] sm:$0xff] }
  0x24   :  { %v263_v9 = vadd.f32 %v231_v52, %v199_v62  ;;  %v170_v11 = vmul.f32 %v138_v7, %v42_v2  ;;  %v234_v12 = vld [vmem:[%s817_s3 + $0xc8] sm:$0xff]  ;;  %v139_v14 = vld [vmem:[%s816_s2 + $0xd0] sm:$0xff]  ;;  %v107_v16 = vadd.f32 %v75_v13, %v43_v8  ;;  %v44_v18 = vld [vmem:[%s814_s0 + $0xd8] sm:$0xff] }
  0x25   :  { %294 = vst [vmem:[%s818_s4 + $0xa8] sm:$0xff] %v262_v61  ;;  %v201_v10 = vadd.f32 %v169_v1, %v105_v0  ;;  %v264_v15 = vadd.f32 %v232_v63, %v200_v4  ;;  %v171_v17 = vmul.f32 %v139_v14, %v43_v8  ;;  %v76_v19 = vld [vmem:[%s815_s1 + $0xd8] sm:$0xff]  ;;  %v235_v23 = vld [vmem:[%s817_s3 + $0xd0] sm:$0xff]  ;;  %v45_v26 = vld [vmem:[%s814_s0 + $0xe0] sm:$0xff] }
  0x26   :  { %v140_v20 = vld [vmem:[%s816_s2 + $0xd8] sm:$0xff]  ;;  %295 = vst [vmem:[%s818_s4 + $0xb0] sm:$0xff] %v263_v9  ;;  %v202_v22 = vadd.f32 %v170_v11, %v106_v6  ;;  %v108_v24 = vadd.f32 %v76_v19, %v44_v18  ;;  %v77_v27 = vld [vmem:[%s815_s1 + $0xe0] sm:$0xff]  ;;  %v46_v32 = vld [vmem:[%s814_s0 + $0xe8] sm:$0xff] }
  0x27   :  { %v265_v21 = vadd.f32 %v233_v5, %v201_v10  ;;  %v172_v25 = vmul.f32 %v140_v20, %v44_v18  ;;  %296 = vst [vmem:[%s818_s4 + $0xb8] sm:$0xff] %v264_v15  ;;  %v203_v28 = vadd.f32 %v171_v17, %v107_v16  ;;  %v236_v29 = vld [vmem:[%s817_s3 + $0xd8] sm:$0xff]  ;;  %v109_v30 = vadd.f32 %v77_v27, %v45_v26  ;;  %v141_v31 = vld [vmem:[%s816_s2 + $0xe0] sm:$0xff]  ;;  %v78_v37 = vld [vmem:[%s815_s1 + $0xe8] sm:$0xff] }
  0x28   :  { %v266_v33 = vadd.f32 %v234_v12, %v202_v22  ;;  %v173_v35 = vmul.f32 %v141_v31, %v45_v26  ;;  %v237_v36 = vld [vmem:[%s817_s3 + $0xe0] sm:$0xff]  ;;  %v142_v38 = vld [vmem:[%s816_s2 + $0xe8] sm:$0xff]  ;;  %v110_v40 = vadd.f32 %v78_v37, %v46_v32  ;;  %v47_v42 = vld [vmem:[%s814_s0 + $0xf0] sm:$0xff] }
  0x29   :  { %297 = vst [vmem:[%s818_s4 + $0xc0] sm:$0xff] %v265_v21  ;;  %v204_v34 = vadd.f32 %v172_v25, %v108_v24  ;;  %v267_v39 = vadd.f32 %v235_v23, %v203_v28  ;;  %v174_v41 = vmul.f32 %v142_v38, %v46_v32  ;;  %v79_v43 = vld [vmem:[%s815_s1 + $0xf0] sm:$0xff]  ;;  %v238_v47 = vld [vmem:[%s817_s3 + $0xe8] sm:$0xff]  ;;  %v48_v50 = vld [vmem:[%s814_s0 + $0xf8] sm:$0xff] }
  0x2a   :  { %v143_v44 = vld [vmem:[%s816_s2 + $0xf0] sm:$0xff]  ;;  %298 = vst [vmem:[%s818_s4 + $0xc8] sm:$0xff] %v266_v33  ;;  %v205_v46 = vadd.f32 %v173_v35, %v109_v30  ;;  %v111_v48 = vadd.f32 %v79_v43, %v47_v42  ;;  %v80_v51 = vld [vmem:[%s815_s1 + $0xf8] sm:$0xff] }
  0x2b   :  { %v268_v45 = vadd.f32 %v236_v29, %v204_v34  ;;  %v175_v49 = vmul.f32 %v143_v44, %v47_v42  ;;  %299 = vst [vmem:[%s818_s4 + $0xd0] sm:$0xff] %v267_v39  ;;  %v206_v52 = vadd.f32 %v174_v41, %v110_v40  ;;  %v239_v53 = vld [vmem:[%s817_s3 + $0xf0] sm:$0xff]  ;;  %v112_v54 = vadd.f32 %v80_v51, %v48_v50  ;;  %v144_v55 = vld [vmem:[%s816_s2 + $0xf8] sm:$0xff] }
  0x2c   :  { %v269_v56 = vadd.f32 %v237_v36, %v205_v46  ;;  %v176_v58 = vmul.f32 %v144_v55, %v48_v50  ;;  %v240_v60 = vld [vmem:[%s817_s3 + $0xf8] sm:$0xff] }
  0x2d   :  { %300 = vst [vmem:[%s818_s4 + $0xd8] sm:$0xff] %v268_v45  ;;  %v207_v57 = vadd.f32 %v175_v49, %v111_v48  ;;  %v270_v59 = vadd.f32 %v238_v47, %v206_v52 }
  0x2e   :  { %301 = vst [vmem:[%s818_s4 + $0xe0] sm:$0xff] %v269_v56  ;;  %v208_v62 = vadd.f32 %v176_v58, %v112_v54 }
  0x2f   :  { %v271_v61 = vadd.f32 %v239_v53, %v207_v57  ;;  %302 = vst [vmem:[%s818_s4 + $0xe8] sm:$0xff] %v270_v59 }
  0x30   :  { %v272_v63 = vadd.f32 %v240_v60, %v208_v62 }
  0x31   :  { %303 = vst [vmem:[%s818_s4 + $0xf0] sm:$0xff] %v271_v61 }
  0x32   :  { %304 = vst [vmem:[%s818_s4 + $0xf8] sm:$0xff] %v272_v63 }

</bundles_post_ra>
